<compile_context>
chip_gen: v5e
topology: v5e:2x2
jax: 0.10.0
libtpu: 0.0.40
codegen_flags: <defaults>
</compile_context>

<pallas_src>
import functools

import numpy as np
import jax
import jax.numpy as jnp
from jax.experimental import pallas as pl
from jax.experimental.pallas import tpu as pltpu

# ----------------------------------------------------------------------------------
# Problem constants (fixed by the PyTorch module and the example input (N, 6, 8, 8)).
# ----------------------------------------------------------------------------------
C1_IN, C1_OUT, C2_IN, C2_OUT = 6, 3, 3, 1
K, S = 5, 3
H_IN = W_IN = 8                 # input spatial size
H1 = W1 = 22                    # layer-1 output: (8-1)*3 - 2*2 + 5
H2, W2 = 66, 68                 # layer-2 output: (22-1)*3 - 2*1 + 5 , (22-1)*3 - 0 + 5
H1P = 24                        # per-batch sublane padding of the layer-1 slab
H2P = 72                        # per-batch sublane padding of the output slab
LW = 128                        # lane width of every slab


def _placement_w(stride, pad, n_in, n_in_pad, n_out, n_out_pad):
    """P[kw][i, o] = 1 iff o == i*stride - pad + kw  (0 <= o < n_out)."""
    p = np.zeros((K, n_in_pad, n_out_pad), np.float32)
    for kw in range(K):
        for i in range(n_in):
            o = i * stride - pad + kw
            if 0 <= o < n_out:
                p[kw, i, o] = 1.0
    return p


# W-axis placement matrices (batch-invariant, 0/1).
_P1W = _placement_w(S, 2, W_IN, W_IN, W1, LW)     # (5, 8, 128)
_P2W = _placement_w(S, 0, W1, LW, W2, LW)         # (5, 128, 128); rows ow1>=22 stay zero


def _s1h_const(nb):
    """(nb*24, 5*nb*8): rows = (batch, oh1), cols = (kh, batch, ih).  Layer-1 H placement."""
    s = np.zeros((nb * H1P, K * nb * H_IN), np.float32)
    for kh in range(K):
        for b in range(nb):
            for ih in range(H_IN):
                oh = ih * S - 2 + kh
                if 0 <= oh < H1:
                    s[b * H1P + oh, kh * nb * H_IN + b * H_IN + ih] = 1.0
    return s


def _s2h_const(nb):
    """(5, nb*72, nb*24): cols with oh1 >= 22 stay zero -> annihilate layer-1 junk rows."""
    s = np.zeros((K, nb * H2P, nb * H1P), np.float32)
    for kh in range(K):
        for b in range(nb):
            for oh1 in range(H1):
                oh2 = oh1 * S - 1 + kh
                if 0 <= oh2 < H2:
                    s[kh, b * H2P + oh2, b * H1P + oh1] = 1.0
    return s


def _decoder_kernel(b1_ref, b2_ref, ws1_ref, s1h_ref, ws2_ref, s2h_ref, x_ref, o_ref, *, nb):
    """One grid step processes `nb` batch elements stacked along sublanes."""
    f32 = jnp.float32
    xbd = x_ref[0]                     # (5*nb*8, 240)  kh-block-diagonal input slab
    s1h = s1h_ref[...]                 # (nb*24, 5*nb*8)

    # ---------------- layer 1: ConvTranspose2d(6 -> 3) + fused tanh -----------------
    # Per output channel: one folded-weight matmul (channel/kw reduction on the MXU)
    # followed by one 0/1 H-placement matmul.  Rows oh1>=22 / cols ow1>=22 of the
    # resulting slab hold tanh(bias) junk; they are killed by S2H / WS2 below.
    chans = []
    for co in range(C1_OUT):
        g = jnp.dot(xbd, ws1_ref[co], preferred_element_type=f32)        # (5*nb*8, 128)
        pre = jnp.dot(s1h, g, preferred_element_type=f32)                # (nb*24, 128)
        chans.append(jnp.tanh(pre + b1_ref[co]))
    y1 = jnp.concatenate(chans, axis=1)                                  # (nb*24, 384)

    # ---------------- layer 2: ConvTranspose2d(3 -> 1) -------------------------------
    out = jnp.zeros((nb * H2P, LW), f32)
    for kh in range(K):
        g2 = jnp.dot(y1, ws2_ref[kh], preferred_element_type=f32)        # (nb*24, 128)
        out = out + jnp.dot(s2h_ref[kh], g2, preferred_element_type=f32)
    out = out + b2_ref[0]

    for b in range(nb):                                                  # lane-dense stores
        o_ref[b] = out[b * H2P:(b + 1) * H2P, :]


def _tensorcores_per_device():
    """2 on devices that expose two TensorCores to one Mosaic grid (v7x / megacore)."""
    try:
        d = jax.devices()[0]
        if d.platform != "tpu":
            return 1
        kind = d.device_kind.lower().replace(" ", "")
        if any(tag in kind for tag in ("v4", "v5p", "7x", "tpu7")):
            return 2
    except Exception:
        pass
    return 1


@functools.partial(jax.jit, static_argnums=2)
def _decoder_forward_impl(x, params, n_steps):
    w1, b1, w2, b2 = params
    n = x.shape[0]
    nb = n // n_steps
    f32 = jnp.float32

    # ---- fold conv weights into the W-placement matrices (exact element-wise ops) ----
    # WS1[co][kh*48 + ci*8 + iw, ow] = sum_kw w1[ci,co,kh,kw] * [ow == iw*3 - 2 + kw]
    ws1 = (w1.astype(f32)[:, :, :, :, None, None]
           * jnp.asarray(_P1W)[None, None, None]).sum(axis=3)            # (ci,co,kh,iw,ow)
    ws1 = ws1.transpose(1, 2, 0, 3, 4).reshape(C1_OUT, K * C1_IN * W_IN, LW)   # (3, 240, 128)
    # WS2[kh][ci*128 + ow1, ow2] = sum_kw w2[ci,0,kh,kw] * [ow2 == ow1*3 + kw]   (ow1 < 22)
    ws2 = (w2.astype(f32)[:, 0][:, :, :, None, None]
           * jnp.asarray(_P2W)[None, None]).sum(axis=2)                  # (ci,kh,ow1,ow2)
    ws2 = ws2.transpose(1, 0, 2, 3).reshape(K, C2_IN * LW, LW)           # (5, 384, 128)

    # ---- kh-block-diagonal, batch-stacked input slab: (n_steps, 5*nb*8, 5*48) --------
    xf = x.astype(f32).transpose(0, 2, 1, 3).reshape(n, H_IN, C1_IN * W_IN)      # (N, 8, 48)
    xs = xf.reshape(n_steps, nb * H_IN, C1_IN * W_IN)                            # (G, nb*8, 48)
    eye_k = jnp.eye(K, dtype=f32)
    xbd = jnp.einsum("kl,gic->gkilc", eye_k, xs).reshape(
        n_steps, K * nb * H_IN, K * C1_IN * W_IN)

    s1h = jnp.asarray(_s1h_const(nb))                                    # (nb*24, 5*nb*8)
    s2h = jnp.asarray(_s2h_const(nb))                                    # (5, nb*72, nb*24)

    out_pad = pl.pallas_call(
        functools.partial(_decoder_kernel, nb=nb),
        out_shape=jax.ShapeDtypeStruct((n, H2P, LW), f32),
        grid=(n_steps,),
        in_specs=[
            pl.BlockSpec(memory_space=pltpu.MemorySpace.SMEM),                        # b1 (3,)
            pl.BlockSpec(memory_space=pltpu.MemorySpace.SMEM),                        # b2 (1,)
            pl.BlockSpec((C1_OUT, K * C1_IN * W_IN, LW), lambda i: (0, 0, 0)),        # WS1
            pl.BlockSpec((nb * H1P, K * nb * H_IN), lambda i: (0, 0)),                # S1H
            pl.BlockSpec((K, C2_IN * LW, LW), lambda i: (0, 0, 0)),                   # WS2
            pl.BlockSpec((K, nb * H2P, nb * H1P), lambda i: (0, 0, 0)),               # S2H
            pl.BlockSpec((1, K * nb * H_IN, K * C1_IN * W_IN), lambda i: (i, 0, 0)),  # XBD
        ],
        out_specs=pl.BlockSpec((nb, H2P, LW), lambda i: (i, 0, 0)),
        compiler_params=pltpu.CompilerParams(dimension_semantics=("parallel",)),
    )(b1.astype(f32), b2.astype(f32), ws1, s1h, ws2, s2h, xbd)

    return out_pad[:, None, :H2, :W2]


def decoder_forward(x, params):
    """x: (N, 6, 8, 8) f32 -> (N, 1, 66, 68) f32 (PyTorch Decoder.forward)."""
    n = x.shape[0]
    n_steps = _tensorcores_per_device()
    if n % n_steps != 0:
        n_steps = 1          # fall back to full batch-stacking on odd batches
    return _decoder_forward_impl(x, params, n_steps)


def decoder_reference(x, params):
    """Pure-JAX reference (lax.conv_general_dilated with lhs_dilation)."""
    w1, b1, w2, b2 = params
    dn = ("NCHW", "OIHW", "NCHW")
    wc1 = jnp.transpose(w1[:, :, ::-1, ::-1], (1, 0, 2, 3))
    y1 = jax.lax.conv_general_dilated(
        x, wc1, (1, 1), [(2, 2), (2, 2)], lhs_dilation=(3, 3),
        dimension_numbers=dn) + b1[None, :, None, None]
    y1 = jnp.tanh(y1)
    wc2 = jnp.transpose(w2[:, :, ::-1, ::-1], (1, 0, 2, 3))
    y2 = jax.lax.conv_general_dilated(
        y1, wc2, (1, 1), [(3, 3), (4, 4)], lhs_dilation=(3, 3),
        dimension_numbers=dn) + b2[None, :, None, None]
    return y2


def init_params(key):
    k1, k2, k3, k4 = jax.random.split(key, 4)
    # PyTorch ConvTranspose2d weight layout: (in_channels, out_channels, kH, kW)
    w1 = jax.random.uniform(k1, (C1_IN, C1_OUT, K, K), jnp.float32, -0.2, 0.2)
    b1 = jax.random.uniform(k2, (C1_OUT,), jnp.float32, -0.2, 0.2)
    w2 = jax.random.uniform(k3, (C2_IN, C2_OUT, K, K), jnp.float32, -0.2, 0.2)
    b2 = jax.random.uniform(k4, (C2_OUT,), jnp.float32, -0.2, 0.2)
    return (w1, b1, w2, b2)


if __name__ == "__main__":
    root = jax.random.PRNGKey(0)
    k_params, k_x = jax.random.split(root)
    params = init_params(k_params)
    # Input (N=2, C=6, H=8, W=8) -> layer-1 (2,3,22,22) -> output (2,1,66,68)
    x = jax.random.normal(k_x, (2, C1_IN, H_IN, W_IN), jnp.float32)

    out = jax.block_until_ready(decoder_forward(x, params))
    assert out.shape == (2, 1, H2, W2), out.shape

    ref = jax.block_until_ready(decoder_reference(x, params))
    max_err = float(jnp.max(jnp.abs(out - ref)))
    assert jnp.allclose(out, ref, atol=1e-4, rtol=1e-4), max_err

    print("KERNEL_OK")
</pallas_src>

<mosaic_0001>
module attributes {stable_mosaic.version = 11 : i64} {
  func.func @_decoder_kernel(%arg0: i32, %arg1: memref<3xf32, #tpu.memory_space<smem>>, %arg2: memref<1xf32, #tpu.memory_space<smem>>, %arg3: memref<3x240x128xf32, #tpu.memory_space<vmem>>, %arg4: memref<48x80xf32, #tpu.memory_space<vmem>>, %arg5: memref<5x384x128xf32, #tpu.memory_space<vmem>>, %arg6: memref<5x144x48xf32, #tpu.memory_space<vmem>>, %arg7: memref<1x80x240xf32, #tpu.memory_space<vmem>>, %arg8: memref<2x72x128xf32, #tpu.memory_space<vmem>>) attributes {dimension_semantics = [#tpu.dimension_semantics<parallel>], iteration_bounds = array<i64: 1>, scalar_prefetch = 0 : i64, scratch_operands = 0 : i64, tpu.core_type = #tpu.core_type<tc>, window_params = [{transform_indices = @transform_0, window_bounds = array<i64: 3>}, {transform_indices = @transform_1, window_bounds = array<i64: 1>}, {pipeline_mode = #tpu.pipeline_mode<synchronous>, transform_indices = @transform_2, window_bounds = array<i64: 3, 240, 128>}, {pipeline_mode = #tpu.pipeline_mode<synchronous>, transform_indices = @transform_3, window_bounds = array<i64: 48, 80>}, {pipeline_mode = #tpu.pipeline_mode<synchronous>, transform_indices = @transform_4, window_bounds = array<i64: 5, 384, 128>}, {pipeline_mode = #tpu.pipeline_mode<synchronous>, transform_indices = @transform_5, window_bounds = array<i64: 5, 144, 48>}, {transform_indices = @transform_6, window_bounds = array<i64: 1, 80, 240>}, {transform_indices = @transform_7, window_bounds = array<i64: 2, 72, 128>}]} {
    %c0 = arith.constant 0 : index
    %c0_0 = arith.constant 0 : index
    %c0_1 = arith.constant 0 : index
    %0 = vector.load %arg7[%c0, %c0_0, %c0_1] : memref<1x80x240xf32, #tpu.memory_space<vmem>>, vector<1x80x240xf32>
    %1 = vector.shape_cast %0 : vector<1x80x240xf32> to vector<80x240xf32>
    %c0_2 = arith.constant 0 : index
    %c0_3 = arith.constant 0 : index
    %2 = vector.load %arg4[%c0_2, %c0_3] : memref<48x80xf32, #tpu.memory_space<vmem>>, vector<48x80xf32>
    %c0_4 = arith.constant 0 : index
    %c0_5 = arith.constant 0 : index
    %c0_6 = arith.constant 0 : index
    %3 = vector.load %arg3[%c0_4, %c0_5, %c0_6] : memref<3x240x128xf32, #tpu.memory_space<vmem>>, vector<1x240x128xf32>
    %4 = vector.shape_cast %3 : vector<1x240x128xf32> to vector<240x128xf32>
    %cst = arith.constant dense<0.000000e+00> : vector<80x128xf32>
    %5 = tpu.matmul %1, %4, %cst {dimension_numbers = #tpu.dot_dimension_numbers<[1], [0], [0], [1], [0, 0, 1, 1], [], []>} : vector<80x240xf32>, vector<240x128xf32>, vector<80x128xf32> -> vector<80x128xf32>
    %cst_7 = arith.constant dense<0.000000e+00> : vector<48x128xf32>
    %6 = tpu.matmul %2, %5, %cst_7 {dimension_numbers = #tpu.dot_dimension_numbers<[1], [0], [0], [1], [0, 0, 1, 1], [], []>} : vector<48x80xf32>, vector<80x128xf32>, vector<48x128xf32> -> vector<48x128xf32>
    %c0_8 = arith.constant 0 : index
    %7 = memref.load %arg1[%c0_8] : memref<3xf32, #tpu.memory_space<smem>>
    %8 = vector.broadcast %7 : f32 to vector<48x128xf32>
    %9 = arith.addf %6, %8 : vector<48x128xf32>
    %10 = math.tanh %9 : vector<48x128xf32>
    %c1 = arith.constant 1 : index
    %c0_9 = arith.constant 0 : index
    %c0_10 = arith.constant 0 : index
    %11 = vector.load %arg3[%c1, %c0_9, %c0_10] : memref<3x240x128xf32, #tpu.memory_space<vmem>>, vector<1x240x128xf32>
    %12 = vector.shape_cast %11 : vector<1x240x128xf32> to vector<240x128xf32>
    %cst_11 = arith.constant dense<0.000000e+00> : vector<80x128xf32>
    %13 = tpu.matmul %1, %12, %cst_11 {dimension_numbers = #tpu.dot_dimension_numbers<[1], [0], [0], [1], [0, 0, 1, 1], [], []>} : vector<80x240xf32>, vector<240x128xf32>, vector<80x128xf32> -> vector<80x128xf32>
    %cst_12 = arith.constant dense<0.000000e+00> : vector<48x128xf32>
    %14 = tpu.matmul %2, %13, %cst_12 {dimension_numbers = #tpu.dot_dimension_numbers<[1], [0], [0], [1], [0, 0, 1, 1], [], []>} : vector<48x80xf32>, vector<80x128xf32>, vector<48x128xf32> -> vector<48x128xf32>
    %c1_13 = arith.constant 1 : index
    %15 = memref.load %arg1[%c1_13] : memref<3xf32, #tpu.memory_space<smem>>
    %16 = vector.broadcast %15 : f32 to vector<48x128xf32>
    %17 = arith.addf %14, %16 : vector<48x128xf32>
    %18 = math.tanh %17 : vector<48x128xf32>
    %c2 = arith.constant 2 : index
    %c0_14 = arith.constant 0 : index
    %c0_15 = arith.constant 0 : index
    %19 = vector.load %arg3[%c2, %c0_14, %c0_15] : memref<3x240x128xf32, #tpu.memory_space<vmem>>, vector<1x240x128xf32>
    %20 = vector.shape_cast %19 : vector<1x240x128xf32> to vector<240x128xf32>
    %cst_16 = arith.constant dense<0.000000e+00> : vector<80x128xf32>
    %21 = tpu.matmul %1, %20, %cst_16 {dimension_numbers = #tpu.dot_dimension_numbers<[1], [0], [0], [1], [0, 0, 1, 1], [], []>} : vector<80x240xf32>, vector<240x128xf32>, vector<80x128xf32> -> vector<80x128xf32>
    %cst_17 = arith.constant dense<0.000000e+00> : vector<48x128xf32>
    %22 = tpu.matmul %2, %21, %cst_17 {dimension_numbers = #tpu.dot_dimension_numbers<[1], [0], [0], [1], [0, 0, 1, 1], [], []>} : vector<48x80xf32>, vector<80x128xf32>, vector<48x128xf32> -> vector<48x128xf32>
    %c2_18 = arith.constant 2 : index
    %23 = memref.load %arg1[%c2_18] : memref<3xf32, #tpu.memory_space<smem>>
    %24 = vector.broadcast %23 : f32 to vector<48x128xf32>
    %25 = arith.addf %22, %24 : vector<48x128xf32>
    %26 = math.tanh %25 : vector<48x128xf32>
    %27 = tpu.concatenate %10, %18, %26 in 1 : vector<48x128xf32>, vector<48x128xf32>, vector<48x128xf32> -> vector<48x384xf32>
    %cst_19 = arith.constant 0.000000e+00 : f32
    %28 = vector.broadcast %cst_19 : f32 to vector<144x128xf32>
    %c0_20 = arith.constant 0 : index
    %c0_21 = arith.constant 0 : index
    %c0_22 = arith.constant 0 : index
    %29 = vector.load %arg5[%c0_20, %c0_21, %c0_22] : memref<5x384x128xf32, #tpu.memory_space<vmem>>, vector<1x384x128xf32>
    %30 = vector.shape_cast %29 : vector<1x384x128xf32> to vector<384x128xf32>
    %cst_23 = arith.constant dense<0.000000e+00> : vector<48x128xf32>
    %31 = tpu.matmul %27, %30, %cst_23 {dimension_numbers = #tpu.dot_dimension_numbers<[1], [0], [0], [1], [0, 0, 1, 1], [], []>} : vector<48x384xf32>, vector<384x128xf32>, vector<48x128xf32> -> vector<48x128xf32>
    %c0_24 = arith.constant 0 : index
    %c0_25 = arith.constant 0 : index
    %c0_26 = arith.constant 0 : index
    %32 = vector.load %arg6[%c0_24, %c0_25, %c0_26] : memref<5x144x48xf32, #tpu.memory_space<vmem>>, vector<1x144x48xf32>
    %33 = vector.shape_cast %32 : vector<1x144x48xf32> to vector<144x48xf32>
    %cst_27 = arith.constant dense<0.000000e+00> : vector<144x128xf32>
    %34 = tpu.matmul %33, %31, %cst_27 {dimension_numbers = #tpu.dot_dimension_numbers<[1], [0], [0], [1], [0, 0, 1, 1], [], []>} : vector<144x48xf32>, vector<48x128xf32>, vector<144x128xf32> -> vector<144x128xf32>
    %35 = arith.addf %28, %34 : vector<144x128xf32>
    %c1_28 = arith.constant 1 : index
    %c0_29 = arith.constant 0 : index
    %c0_30 = arith.constant 0 : index
    %36 = vector.load %arg5[%c1_28, %c0_29, %c0_30] : memref<5x384x128xf32, #tpu.memory_space<vmem>>, vector<1x384x128xf32>
    %37 = vector.shape_cast %36 : vector<1x384x128xf32> to vector<384x128xf32>
    %cst_31 = arith.constant dense<0.000000e+00> : vector<48x128xf32>
    %38 = tpu.matmul %27, %37, %cst_31 {dimension_numbers = #tpu.dot_dimension_numbers<[1], [0], [0], [1], [0, 0, 1, 1], [], []>} : vector<48x384xf32>, vector<384x128xf32>, vector<48x128xf32> -> vector<48x128xf32>
    %c1_32 = arith.constant 1 : index
    %c0_33 = arith.constant 0 : index
    %c0_34 = arith.constant 0 : index
    %39 = vector.load %arg6[%c1_32, %c0_33, %c0_34] : memref<5x144x48xf32, #tpu.memory_space<vmem>>, vector<1x144x48xf32>
    %40 = vector.shape_cast %39 : vector<1x144x48xf32> to vector<144x48xf32>
    %cst_35 = arith.constant dense<0.000000e+00> : vector<144x128xf32>
    %41 = tpu.matmul %40, %38, %cst_35 {dimension_numbers = #tpu.dot_dimension_numbers<[1], [0], [0], [1], [0, 0, 1, 1], [], []>} : vector<144x48xf32>, vector<48x128xf32>, vector<144x128xf32> -> vector<144x128xf32>
    %42 = arith.addf %35, %41 : vector<144x128xf32>
    %c2_36 = arith.constant 2 : index
    %c0_37 = arith.constant 0 : index
    %c0_38 = arith.constant 0 : index
    %43 = vector.load %arg5[%c2_36, %c0_37, %c0_38] : memref<5x384x128xf32, #tpu.memory_space<vmem>>, vector<1x384x128xf32>
    %44 = vector.shape_cast %43 : vector<1x384x128xf32> to vector<384x128xf32>
    %cst_39 = arith.constant dense<0.000000e+00> : vector<48x128xf32>
    %45 = tpu.matmul %27, %44, %cst_39 {dimension_numbers = #tpu.dot_dimension_numbers<[1], [0], [0], [1], [0, 0, 1, 1], [], []>} : vector<48x384xf32>, vector<384x128xf32>, vector<48x128xf32> -> vector<48x128xf32>
    %c2_40 = arith.constant 2 : index
    %c0_41 = arith.constant 0 : index
    %c0_42 = arith.constant 0 : index
    %46 = vector.load %arg6[%c2_40, %c0_41, %c0_42] : memref<5x144x48xf32, #tpu.memory_space<vmem>>, vector<1x144x48xf32>
    %47 = vector.shape_cast %46 : vector<1x144x48xf32> to vector<144x48xf32>
    %cst_43 = arith.constant dense<0.000000e+00> : vector<144x128xf32>
    %48 = tpu.matmul %47, %45, %cst_43 {dimension_numbers = #tpu.dot_dimension_numbers<[1], [0], [0], [1], [0, 0, 1, 1], [], []>} : vector<144x48xf32>, vector<48x128xf32>, vector<144x128xf32> -> vector<144x128xf32>
    %49 = arith.addf %42, %48 : vector<144x128xf32>
    %c3 = arith.constant 3 : index
    %c0_44 = arith.constant 0 : index
    %c0_45 = arith.constant 0 : index
    %50 = vector.load %arg5[%c3, %c0_44, %c0_45] : memref<5x384x128xf32, #tpu.memory_space<vmem>>, vector<1x384x128xf32>
    %51 = vector.shape_cast %50 : vector<1x384x128xf32> to vector<384x128xf32>
    %cst_46 = arith.constant dense<0.000000e+00> : vector<48x128xf32>
    %52 = tpu.matmul %27, %51, %cst_46 {dimension_numbers = #tpu.dot_dimension_numbers<[1], [0], [0], [1], [0, 0, 1, 1], [], []>} : vector<48x384xf32>, vector<384x128xf32>, vector<48x128xf32> -> vector<48x128xf32>
    %c3_47 = arith.constant 3 : index
    %c0_48 = arith.constant 0 : index
    %c0_49 = arith.constant 0 : index
    %53 = vector.load %arg6[%c3_47, %c0_48, %c0_49] : memref<5x144x48xf32, #tpu.memory_space<vmem>>, vector<1x144x48xf32>
    %54 = vector.shape_cast %53 : vector<1x144x48xf32> to vector<144x48xf32>
    %cst_50 = arith.constant dense<0.000000e+00> : vector<144x128xf32>
    %55 = tpu.matmul %54, %52, %cst_50 {dimension_numbers = #tpu.dot_dimension_numbers<[1], [0], [0], [1], [0, 0, 1, 1], [], []>} : vector<144x48xf32>, vector<48x128xf32>, vector<144x128xf32> -> vector<144x128xf32>
    %56 = arith.addf %49, %55 : vector<144x128xf32>
    %c4 = arith.constant 4 : index
    %c0_51 = arith.constant 0 : index
    %c0_52 = arith.constant 0 : index
    %57 = vector.load %arg5[%c4, %c0_51, %c0_52] : memref<5x384x128xf32, #tpu.memory_space<vmem>>, vector<1x384x128xf32>
    %58 = vector.shape_cast %57 : vector<1x384x128xf32> to vector<384x128xf32>
    %cst_53 = arith.constant dense<0.000000e+00> : vector<48x128xf32>
    %59 = tpu.matmul %27, %58, %cst_53 {dimension_numbers = #tpu.dot_dimension_numbers<[1], [0], [0], [1], [0, 0, 1, 1], [], []>} : vector<48x384xf32>, vector<384x128xf32>, vector<48x128xf32> -> vector<48x128xf32>
    %c4_54 = arith.constant 4 : index
    %c0_55 = arith.constant 0 : index
    %c0_56 = arith.constant 0 : index
    %60 = vector.load %arg6[%c4_54, %c0_55, %c0_56] : memref<5x144x48xf32, #tpu.memory_space<vmem>>, vector<1x144x48xf32>
    %61 = vector.shape_cast %60 : vector<1x144x48xf32> to vector<144x48xf32>
    %cst_57 = arith.constant dense<0.000000e+00> : vector<144x128xf32>
    %62 = tpu.matmul %61, %59, %cst_57 {dimension_numbers = #tpu.dot_dimension_numbers<[1], [0], [0], [1], [0, 0, 1, 1], [], []>} : vector<144x48xf32>, vector<48x128xf32>, vector<144x128xf32> -> vector<144x128xf32>
    %63 = arith.addf %56, %62 : vector<144x128xf32>
    %c0_58 = arith.constant 0 : index
    %64 = memref.load %arg2[%c0_58] : memref<1xf32, #tpu.memory_space<smem>>
    %65 = vector.broadcast %64 : f32 to vector<144x128xf32>
    %66 = arith.addf %63, %65 : vector<144x128xf32>
    %67 = vector.extract_strided_slice %66 {offsets = [0, 0], sizes = [72, 128], strides = [1, 1]} : vector<144x128xf32> to vector<72x128xf32>
    %c0_59 = arith.constant 0 : index
    %c0_60 = arith.constant 0 : index
    %c0_61 = arith.constant 0 : index
    %68 = vector.load %arg8[%c0_59, %c0_60, %c0_61] : memref<2x72x128xf32, #tpu.memory_space<vmem>>, vector<1x72x128xf32>
    %69 = vector.shape_cast %68 : vector<1x72x128xf32> to vector<72x128xf32>
    %70 = vector.shape_cast %67 : vector<72x128xf32> to vector<1x72x128xf32>
    tpu.vector_store %arg8[%c0_59, %c0_60, %c0_61], %70 {strides = array<i32>} : memref<2x72x128xf32, #tpu.memory_space<vmem>>, vector<1x72x128xf32>,
    %71 = vector.extract_strided_slice %66 {offsets = [72, 0], sizes = [72, 128], strides = [1, 1]} : vector<144x128xf32> to vector<72x128xf32>
    %c1_62 = arith.constant 1 : index
    %c0_63 = arith.constant 0 : index
    %c0_64 = arith.constant 0 : index
    %72 = vector.load %arg8[%c1_62, %c0_63, %c0_64] : memref<2x72x128xf32, #tpu.memory_space<vmem>>, vector<1x72x128xf32>
    %73 = vector.shape_cast %72 : vector<1x72x128xf32> to vector<72x128xf32>
    %74 = vector.shape_cast %71 : vector<72x128xf32> to vector<1x72x128xf32>
    tpu.vector_store %arg8[%c1_62, %c0_63, %c0_64], %74 {strides = array<i32>} : memref<2x72x128xf32, #tpu.memory_space<vmem>>, vector<1x72x128xf32>,
    return
  }
  func.func @transform_0(%arg0: i32) -> i32 {
    %c0_i32 = arith.constant 0 : i32
    %c0_i32_0 = arith.constant 0 : i32
    return %c0_i32 : i32
  }
  func.func @transform_1(%arg0: i32) -> i32 {
    %c0_i32 = arith.constant 0 : i32
    %c0_i32_0 = arith.constant 0 : i32
    return %c0_i32 : i32
  }
  func.func @transform_2(%arg0: i32) -> (i32, i32, i32) {
    %c0_i32 = arith.constant 0 : i32
    %c0_i32_0 = arith.constant 0 : i32
    %c0_i32_1 = arith.constant 0 : i32
    %c0_i32_2 = arith.constant 0 : i32
    return %c0_i32, %c0_i32_0, %c0_i32_1 : i32, i32, i32
  }
  func.func @transform_3(%arg0: i32) -> (i32, i32) {
    %c0_i32 = arith.constant 0 : i32
    %c0_i32_0 = arith.constant 0 : i32
    %c0_i32_1 = arith.constant 0 : i32
    return %c0_i32, %c0_i32_0 : i32, i32
  }
  func.func @transform_4(%arg0: i32) -> (i32, i32, i32) {
    %c0_i32 = arith.constant 0 : i32
    %c0_i32_0 = arith.constant 0 : i32
    %c0_i32_1 = arith.constant 0 : i32
    %c0_i32_2 = arith.constant 0 : i32
    return %c0_i32, %c0_i32_0, %c0_i32_1 : i32, i32, i32
  }
  func.func @transform_5(%arg0: i32) -> (i32, i32, i32) {
    %c0_i32 = arith.constant 0 : i32
    %c0_i32_0 = arith.constant 0 : i32
    %c0_i32_1 = arith.constant 0 : i32
    %c0_i32_2 = arith.constant 0 : i32
    return %c0_i32, %c0_i32_0, %c0_i32_1 : i32, i32, i32
  }
  func.func @transform_6(%arg0: i32) -> (i32, i32, i32) {
    %c0_i32 = arith.constant 0 : i32
    %c0_i32_0 = arith.constant 0 : i32
    %c0_i32_1 = arith.constant 0 : i32
    return %arg0, %c0_i32, %c0_i32_0 : i32, i32, i32
  }
  func.func @transform_7(%arg0: i32) -> (i32, i32, i32) {
    %c0_i32 = arith.constant 0 : i32
    %c0_i32_0 = arith.constant 0 : i32
    %c0_i32_1 = arith.constant 0 : i32
    return %arg0, %c0_i32, %c0_i32_0 : i32, i32, i32
  }
}

</mosaic_0001>

<bundles_post_ra>
// kernel: _decoder_forward_impl.1
= control target key start
LH: loop header
LB: loop body
LE: loop exit
PB: predicated region body
PF: predicated region fallthrough
CT: control target
= control target key end

     0   :  { %13 = vsyncpa [#allocation4], 0  ;;  %s2756_s27 = smov [#allocation3]   ;;  %s4947_s0 = inlined_call_operand.vmem [shape: f32[3], index: 0, kind: input, shape index: {}]   ;;  %s4948_s1 = inlined_call_operand.<no memory space> [shape: f32[1], index: 1, kind: input, shape index: {}]   ;;  %s4949_s2 = inlined_call_operand.vmem [shape: f32[3,240,128], index: 2, kind: input, shape index: {}]   ;;  %s4950_s3 = inlined_call_operand.vmem [shape: f32[48,80], index: 3, kind: input, shape index: {}]   ;;  %s4951_s4 = inlined_call_operand.vmem [shape: f32[5,384,128], index: 4, kind: input, shape index: {}]   ;;  %s4952_s5 = inlined_call_operand.vmem [shape: f32[5,144,48], index: 5, kind: input, shape index: {}]   ;;  %s4953_s6 = inlined_call_operand.vmem [shape: f32[1,80,240], index: 6, kind: input, shape index: {}]   ;;  %s4954_s7 = inlined_call_operand.vmem [shape: f32[2,72,128], index: 7, kind: output, shape index: {}]  }
   0x1   :  { %s19_s26 = sshll.u32 %s4947_s0, 4  ;;  %s20_s26 = int_to_ptr.vmem [resolvable:$true] %s19_s26 }
   0x2   :  { %22 = dma.vmem_to_smem %s20_s26, 16, %s2756_s27, [#allocation4]  }
   0x3   :  { %2754 = dma.done.wait [#allocation4], 16  }
   0x4   :  { %2755 = vsyncadd [#allocation4], 4294967280 }
   0x5   :  { %39 = sfence }
   0x6   :  { %v81_v0 = vld [vmem:[%s4949_s2 + $0x78] sm:$0xff]  ;;  %v80_v1 = vld [vmem:[%s4949_s2 + $0x70] sm:$0xff]  ;;  %v95_v2 = vld [vmem:[%s4949_s2 + $0xe8] sm:$0xff]  ;;  %vm96_vm0 = vcmask 916480   ;;  %vm223_vm1 = vcmask 654336   ;;  %s221_s14 = sld [smem:[#allocation3]] }
   0x7   :  { %127 = vmatpush.msra.mxu0 %v81_v0  ;;  %v94_v3 = vld [vmem:[%s4949_s2 + $0xe0] sm:$0xff]  ;;  %v79_v4 = vld [vmem:[%s4949_s2 + $0x68] sm:$0xff]  ;;  %176 = vmatpush.msra.mxu1 %v95_v2  ;;  %v93_v5 = vld [vmem:[%s4949_s2 + $0xd8] sm:$0xff]  ;;  %s2309_s15 = sld [smem:[#allocation3 + $0x2]]  ;;  %vm963_vm2 = vcmask 392192  }
   0x8   :  { %v78_v6 = vld [vmem:[%s4949_s2 + $0x60] sm:$0xff]  ;;  %v92_v7 = vld [vmem:[%s4949_s2 + $0xd0] sm:$0xff]  ;;  %v77_v8 = vld [vmem:[%s4949_s2 + $0x58] sm:$0xff] }
   0x9   :  { %128 = vmatpush.msra.mxu0 %v80_v1  ;;  %177 = vmatpush.msra.mxu1 %v94_v3  ;;  %v91_v9 = vld [vmem:[%s4949_s2 + $0xc8] sm:$0xff]  ;;  %v76_v10 = vld [vmem:[%s4949_s2 + $0x50] sm:$0xff]  ;;  %v90_v11 = vld [vmem:[%s4949_s2 + $0xc0] sm:$0xff] }
   0xa   :  { %v75_v12 = vld [vmem:[%s4949_s2 + $0x48] sm:$0xff]  ;;  %v89_v13 = vld [vmem:[%s4949_s2 + $0xb8] sm:$0xff]  ;;  %v74_v14 = vld [vmem:[%s4949_s2 + $0x40] sm:$0xff] }
   0xb   :  { %129 = vmatpush.msra.mxu0 %v79_v4  ;;  %178 = vmatpush.msra.mxu1 %v93_v5  ;;  %v88_v15 = vld [vmem:[%s4949_s2 + $0xb0] sm:$0xff]  ;;  %v73_v16 = vld [vmem:[%s4949_s2 + $0x38] sm:$0xff]  ;;  %v87_v17 = vld [vmem:[%s4949_s2 + $0xa8] sm:$0xff] }
   0xc   :  { %v72_v18 = vld [vmem:[%s4949_s2 + $0x30] sm:$0xff]  ;;  %v86_v19 = vld [vmem:[%s4949_s2 + $0xa0] sm:$0xff]  ;;  %v71_v20 = vld [vmem:[%s4949_s2 + $0x28] sm:$0xff] }
   0xd   :  { %130 = vmatpush.msra.mxu0 %v78_v6  ;;  %179 = vmatpush.msra.mxu1 %v92_v7  ;;  %v85_v21 = vld [vmem:[%s4949_s2 + $0x98] sm:$0xff]  ;;  %v70_v22 = vld [vmem:[%s4949_s2 + $0x20] sm:$0xff]  ;;  %v84_v23 = vld [vmem:[%s4949_s2 + $0x90] sm:$0xff] }
   0xe   :  { %v69_v24 = vld [vmem:[%s4949_s2 + $0x18] sm:$0xff]  ;;  %v83_v25 = vld [vmem:[%s4949_s2 + $0x88] sm:$0xff]  ;;  %v68_v26 = vld [vmem:[%s4949_s2 + $0x10] sm:$0xff] }
   0xf   :  { %131 = vmatpush.msra.mxu0 %v77_v8  ;;  %180 = vmatpush.msra.mxu1 %v91_v9  ;;  %v82_v27 = vld [vmem:[%s4949_s2 + $0x80] sm:$0xff]  ;;  %v67_v28 = vld [vmem:[%s4949_s2 + $0x8] sm:$0xff]  ;;  %v2906_v32 = vld [vmem:[%s4953_s6 + $0x18] sm:$0xff] }
  0x10   :  { %v2890_v29 = vld [vmem:[%s4953_s6 + $0x8] sm:$0xff]  ;;  %v66_v30 = vld [vmem:[%s4949_s2] sm:$0xff]  ;;  %v2911_v33 = vld [vmem:[%s4953_s6 + $0x10] sm:$0xff] }
  0x11   :  { %132 = vmatpush.msra.mxu0 %v76_v10  ;;  %181 = vmatpush.msra.mxu1 %v90_v11  ;;  %v2898_v31 = vld [vmem:[%s4953_s6] sm:$0xff]  ;;  %v2919_v34 = vld [vmem:[%s4953_s6 + $0x28] sm:$0xff]  ;;  %v2932_v36 = vld [vmem:[%s4953_s6 + $0x38] sm:$0xff] }
  0x12   :  { %v2924_v35 = vld [vmem:[%s4953_s6 + $0x20] sm:$0xff]  ;;  %v2937_v37 = vld [vmem:[%s4953_s6 + $0x30] sm:$0xff]  ;;  %v2945_v38 = vld [vmem:[%s4953_s6 + $0x48] sm:$0xff] }
  0x13   :  { %133 = vmatpush.msra.mxu0 %v75_v12  ;;  %182 = vmatpush.msra.mxu1 %v89_v13  ;;  %v2950_v39 = vld [vmem:[%s4953_s6 + $0x40] sm:$0xff]  ;;  %v2958_v40 = vld [vmem:[%s4953_s6 + $0x58] sm:$0xff]  ;;  %v2963_v41 = vld [vmem:[%s4953_s6 + $0x50] sm:$0xff] }
  0x14   :  { %v2971_v42 = vld [vmem:[%s4953_s6 + $0x68] sm:$0xff]  ;;  %v2976_v43 = vld [vmem:[%s4953_s6 + $0x60] sm:$0xff]  ;;  %v2984_v44 = vld [vmem:[%s4953_s6 + $0x78] sm:$0xff] }
  0x15   :  { %134 = vmatpush.msra.mxu0 %v74_v14  ;;  %183 = vmatpush.msra.mxu1 %v88_v15  ;;  %v2989_v45 = vld [vmem:[%s4953_s6 + $0x70] sm:$0xff]  ;;  %v2997_v46 = vld [vmem:[%s4953_s6 + $0x88] sm:$0xff]  ;;  %v3002_v47 = vld [vmem:[%s4953_s6 + $0x80] sm:$0xff] }
  0x16   :  { %v3010_v48 = vld [vmem:[%s4953_s6 + $0x98] sm:$0xff]  ;;  %v3015_v49 = vld [vmem:[%s4953_s6 + $0x90] sm:$0xff]  ;;  %v2298_v2 = vld [vmem:[%s4949_s2 + $0x2c8] sm:$0xff] }
  0x17   :  { %135 = vmatpush.msra.mxu0 %v73_v16  ;;  %184 = vmatpush.msra.mxu1 %v87_v17  ;;  %v2297_v4 = vld [vmem:[%s4949_s2 + $0x2c0] sm:$0xff]  ;;  %v2296_v5 = vld [vmem:[%s4949_s2 + $0x2b8] sm:$0xff]  ;;  %v2295_v7 = vld [vmem:[%s4949_s2 + $0x2b0] sm:$0xff] }
  0x18   :  { %531 = vmatpush.msra.mxu3 %v2298_v2  ;;  %v2294_v8 = vld [vmem:[%s4949_s2 + $0x2a8] sm:$0xff]  ;;  %v2293_v9 = vld [vmem:[%s4949_s2 + $0x2a0] sm:$0xff]  ;;  %v2292_v11 = vld [vmem:[%s4949_s2 + $0x298] sm:$0xff] }
  0x19   :  { %136 = vmatpush.msra.mxu0 %v72_v18  ;;  %185 = vmatpush.msra.mxu1 %v86_v19  ;;  %v2291_v14 = vld [vmem:[%s4949_s2 + $0x290] sm:$0xff]  ;;  %v2290_v16 = vld [vmem:[%s4949_s2 + $0x288] sm:$0xff]  ;;  %v2289_v18 = vld [vmem:[%s4949_s2 + $0x280] sm:$0xff] }
  0x1a   :  { %532 = vmatpush.msra.mxu3 %v2297_v4  ;;  %v2278_v2 = vld [vmem:[%s4949_s2 + $0x228] sm:$0xff]  ;;  %v2277_v4 = vld [vmem:[%s4949_s2 + $0x220] sm:$0xff] }
  0x1b   :  { %137 = vmatpush.msra.mxu0 %v71_v20  ;;  %186 = vmatpush.msra.mxu1 %v85_v21  ;;  %v2288_v20 = vld [vmem:[%s4949_s2 + $0x278] sm:$0xff] }
  0x1c   :  { %533 = vmatpush.msra.mxu3 %v2296_v5  ;;  %v2230_v5 = vld [vmem:[%s4949_s2 + $0x130] sm:$0xff] }
  0x1d   :  { %138 = vmatpush.msra.mxu0 %v70_v22  ;;  %187 = vmatpush.msra.mxu1 %v84_v23  ;;  %v2287_v22 = vld [vmem:[%s4949_s2 + $0x270] sm:$0xff] }
  0x1e   :  { %534 = vmatpush.msra.mxu3 %v2295_v7  ;;  %v2276_v7 = vld [vmem:[%s4949_s2 + $0x218] sm:$0xff] }
  0x1f   :  { %139 = vmatpush.msra.mxu0 %v69_v24  ;;  %188 = vmatpush.msra.mxu1 %v83_v25  ;;  %v2286_v24 = vld [vmem:[%s4949_s2 + $0x268] sm:$0xff] }
  0x20   :  { %535 = vmatpush.msra.mxu3 %v2294_v8  ;;  %v2229_v8 = vld [vmem:[%s4949_s2 + $0x128] sm:$0xff] }
  0x21   :  { %140 = vmatpush.msra.mxu0 %v68_v26  ;;  %189 = vmatpush.msra.mxu1 %v82_v27  ;;  %v2285_v26 = vld [vmem:[%s4949_s2 + $0x260] sm:$0xff] }
  0x22   :  { %2206 = vmatmul.msk.f32.vlgmr.msra.gmra.mxu1 %vm96_vm0, %v2890_v29  ;;  %536 = vmatpush.msra.mxu3 %v2293_v9  ;;  %v2275_v9 = vld [vmem:[%s4949_s2 + $0x210] sm:$0xff] }
  0x23   :  { %141 = vmatpush.msra.mxu0 %v67_v28 }
  0x24   :  { %537 = vmatpush.msra.mxu3 %v2292_v11  ;;  %v2274_v11 = vld [vmem:[%s4949_s2 + $0x208] sm:$0xff] }
  0x25   :  { %142 = vmatpush.msra.mxu0 %v66_v30 }
  0x26   :  { %143 = vmatmul.f32.vlgmr.msra.gmra.mxu0 %v2898_v31  ;;  %538 = vmatpush.msra.mxu3 %v2291_v14  ;;  %v2226_v14 = vld [vmem:[%s4949_s2 + $0x110] sm:$0xff] }
  0x28   :  { %539 = vmatpush.msra.mxu3 %v2290_v16  ;;  %v2272_v16 = vld [vmem:[%s4949_s2 + $0x1f8] sm:$0xff] }
  0x2a   :  { %2207 = vmatmul.msk.f32.gmra.mxu1 %vm96_vm0, %v2906_v32  ;;  %540 = vmatpush.msra.mxu3 %v2289_v18  ;;  %v2271_v18 = vld [vmem:[%s4949_s2 + $0x1f0] sm:$0xff] }
  0x2c   :  { %541 = vmatpush.msra.mxu3 %v2288_v20  ;;  %v2270_v20 = vld [vmem:[%s4949_s2 + $0x1e8] sm:$0xff] }
  0x2e   :  { %146 = vmatmul.f32.gmra.mxu0 %v2911_v33  ;;  %542 = vmatpush.msra.mxu3 %v2287_v22  ;;  %v2269_v22 = vld [vmem:[%s4949_s2 + $0x1e0] sm:$0xff] }
  0x30   :  { %543 = vmatpush.msra.mxu3 %v2286_v24  ;;  %v2251_v24 = vld [vmem:[%s4949_s2 + $0x1d8] sm:$0xff] }
  0x32   :  { %2208 = vmatmul.msk.f32.gmra.mxu1 %vm96_vm0, %v2919_v34  ;;  %544 = vmatpush.msra.mxu3 %v2285_v26  ;;  %v2245_v26 = vld [vmem:[%s4949_s2 + $0x1a8] sm:$0xff] }
  0x33   :  { %2299 = vmatmul.msk.f32.vlgmr.msra.gmra.mxu3 %vm96_vm0, %v2890_v29 }
  0x36   :  { %149 = vmatmul.f32.gmra.mxu0 %v2924_v35 }
  0x3a   :  { %2209 = vmatmul.msk.f32.gmra.mxu1 %vm96_vm0, %v2932_v36 }
  0x3b   :  { %2300 = vmatmul.msk.f32.gmra.mxu3 %vm96_vm0, %v2906_v32 }
  0x3e   :  { %152 = vmatmul.f32.gmra.mxu0 %v2937_v37 }
  0x42   :  { %2210 = vmatmul.msk.f32.gmra.mxu1 %vm96_vm0, %v2945_v38 }
  0x43   :  { %2301 = vmatmul.msk.f32.gmra.mxu3 %vm96_vm0, %v2919_v34 }
  0x46   :  { %155 = vmatmul.f32.gmra.mxu0 %v2950_v39 }
  0x4a   :  { %2211 = vmatmul.msk.f32.gmra.mxu1 %vm96_vm0, %v2958_v40 }
  0x4b   :  { %2302 = vmatmul.msk.f32.gmra.mxu3 %vm96_vm0, %v2932_v36 }
  0x4e   :  { %158 = vmatmul.f32.gmra.mxu0 %v2963_v41 }
  0x52   :  { %2212 = vmatmul.msk.f32.gmra.mxu1 %vm96_vm0, %v2971_v42 }
  0x53   :  { %2303 = vmatmul.msk.f32.gmra.mxu3 %vm96_vm0, %v2945_v38 }
  0x56   :  { %161 = vmatmul.f32.gmra.mxu0 %v2976_v43 }
  0x5a   :  { %2213 = vmatmul.msk.f32.gmra.mxu1 %vm96_vm0, %v2984_v44 }
  0x5b   :  { %2304 = vmatmul.msk.f32.gmra.mxu3 %vm96_vm0, %v2958_v40 }
  0x5e   :  { %164 = vmatmul.f32.gmra.mxu0 %v2989_v45 }
  0x62   :  { %2214 = vmatmul.msk.f32.gmra.mxu1 %vm96_vm0, %v2997_v46 }
  0x63   :  { %2305 = vmatmul.msk.f32.gmra.mxu3 %vm96_vm0, %v2971_v42 }
  0x66   :  { %167 = vmatmul.f32.gmra.mxu0 %v3002_v47 }
  0x6a   :  { %2215 = vmatmul.msk.f32.gmra.mxu1 %vm96_vm0, %v3010_v48 }
  0x6b   :  { %2306 = vmatmul.msk.f32.gmra.mxu3 %vm96_vm0, %v2984_v44 }
  0x6e   :  { %170 = vmatmul.f32.gmra.mxu0 %v3015_v49 }
  0x73   :  { %2307 = vmatmul.msk.f32.gmra.mxu3 %vm96_vm0, %v2997_v46 }
  0x7b   :  { %2308 = vmatmul.msk.f32.gmra.mxu3 %vm96_vm0, %v3010_v48 }
  0x9f   :  { %v3020_v50 = vpop.f32.mrf.mxu1 }
  0xa3   :  { %v3022_v51 = vpop.f32.mrf.mxu0 }
  0xa4   :  { %v192_v30 = vadd.f32 %v3020_v50, %v3022_v51  ;;  %v2283_v50 = vld [vmem:[%s4949_s2 + $0x250] sm:$0xff]  ;;  %v2236_v51 = vld [vmem:[%s4949_s2 + $0x160] sm:$0xff] }
  0xa7   :  { %v3024_v52 = vpop.f32.mrf.mxu1 }
  0xab   :  { %v3026_v53 = vpop.f32.mrf.mxu0 }
  0xac   :  { %v195_v28 = vadd.f32 %v3024_v52, %v3026_v53  ;;  %v3096_v52 = vld [vmem:[%s4950_s3] sm:$0xff]  ;;  %v2282_v53 = vld [vmem:[%s4949_s2 + $0x248] sm:$0xff] }
  0xaf   :  { %v3028_v54 = vpop.f32.mrf.mxu1 }
  0xb3   :  { %v3030_v55 = vpop.f32.mrf.mxu0 }
  0xb4   :  { %v198_v27 = vadd.f32 %v3028_v54, %v3030_v55  ;;  %v2284_v54 = vld [vmem:[%s4949_s2 + $0x258] sm:$0xff]  ;;  %v2237_v55 = vld [vmem:[%s4949_s2 + $0x168] sm:$0xff] }
  0xb7   :  { %v200_v56 = vpop.f32.mrf.mxu1 }
  0xbb   :  { %v153_v57 = vpop.f32.mrf.mxu0 }
  0xbc   :  { %v201_v25 = vadd.f32 %v200_v56, %v153_v57  ;;  %v3085_v56 = vld [vmem:[%s4950_s3 + $0x10] sm:$0xff]  ;;  %v2235_v57 = vld [vmem:[%s4949_s2 + $0x158] sm:$0xff] }
  0xbf   :  { %v203_v58 = vpop.f32.mrf.mxu1 }
  0xc3   :  { %v156_v59 = vpop.f32.mrf.mxu0 }
  0xc4   :  { %v204_v23 = vadd.f32 %v203_v58, %v156_v59  ;;  %v2281_v58 = vld [vmem:[%s4949_s2 + $0x240] sm:$0xff]  ;;  %v2234_v59 = vld [vmem:[%s4949_s2 + $0x150] sm:$0xff] }
  0xc7   :  { %v206_v60 = vpop.f32.mrf.mxu1 }
  0xcb   :  { %v159_v61 = vpop.f32.mrf.mxu0 }
  0xcc   :  { %v207_v21 = vadd.f32 %v206_v60, %v159_v61  ;;  %v3125_v60 = vld [vmem:[%s4950_s3 + $0x18] sm:$0xff] }
  0xcd   :  { %v2280_v61 = vld [vmem:[%s4949_s2 + $0x238] sm:$0xff] }
  0xcf   :  { %v209_v62 = vpop.f32.mrf.mxu1 }
  0xd3   :  { %v162_v63 = vpop.f32.mrf.mxu0 }
  0xd4   :  { %v210_v19 = vadd.f32 %v209_v62, %v162_v63  ;;  %v2233_v62 = vld [vmem:[%s4949_s2 + $0x148] sm:$0xff] }
  0xd5   :  { %v3136_v63 = vld [vmem:[%s4950_s3 + $0x8] sm:$0xff] }
  0xd7   :  { %v212_v0 = vpop.f32.mrf.mxu1 }
  0xdb   :  { %v165_v1 = vpop.f32.mrf.mxu0 }
  0xdc   :  { %v213_v17 = vadd.f32 %v212_v0, %v165_v1  ;;  %v2279_v0 = vld [vmem:[%s4949_s2 + $0x230] sm:$0xff]  ;;  %v2232_v1 = vld [vmem:[%s4949_s2 + $0x140] sm:$0xff] }
  0xdf   :  { %v215_v3 = vpop.f32.mrf.mxu1 }
  0xe3   :  { %v168_v6 = vpop.f32.mrf.mxu0 }
  0xe4   :  { %v216_v15 = vadd.f32 %v215_v3, %v168_v6  ;;  %v2231_v3 = vld [vmem:[%s4949_s2 + $0x138] sm:$0xff]  ;;  %v3165_v6 = vld [vmem:[%s4950_s3 + $0x20] sm:$0xff] }
  0xe7   :  { %v218_v10 = vpop.f32.mrf.mxu1 }
  0xeb   :  { %v171_v12 = vpop.f32.mrf.mxu0 }
  0xec   :  { %v219_v13 = vadd.f32 %v218_v10, %v171_v12  ;;  %v2228_v10 = vld [vmem:[%s4949_s2 + $0x120] sm:$0xff]  ;;  %v2227_v12 = vld [vmem:[%s4949_s2 + $0x118] sm:$0xff] }
  0xee   :  { %248 = vmatpush.msrb.mxu0 %v219_v13  ;;  %2679 = vmatpush.msra.mxu2 %v219_v13  ;;  %v2273_v13 = vld [vmem:[%s4949_s2 + $0x200] sm:$0xff] }
  0xf0   :  { %249 = vmatpush.msrb.mxu0 %v216_v15  ;;  %2680 = vmatpush.msra.mxu2 %v216_v15  ;;  %v3198_v15 = vld [vmem:[%s4950_s3 + $0x28] sm:$0xff] }
  0xf2   :  { %250 = vmatpush.msrb.mxu0 %v213_v17  ;;  %2681 = vmatpush.msra.mxu2 %v213_v17  ;;  %v2225_v17 = vld [vmem:[%s4949_s2 + $0x108] sm:$0xff] }
  0xf4   :  { %251 = vmatpush.msrb.mxu0 %v210_v19  ;;  %2682 = vmatpush.msra.mxu2 %v210_v19  ;;  %v2224_v19 = vld [vmem:[%s4949_s2 + $0x100] sm:$0xff] }
  0xf6   :  { %252 = vmatpush.msrb.mxu0 %v207_v21  ;;  %2683 = vmatpush.msra.mxu2 %v207_v21  ;;  %v2223_v21 = vld [vmem:[%s4949_s2 + $0xf8] sm:$0xff] }
  0xf8   :  { %253 = vmatpush.msrb.mxu0 %v204_v23  ;;  %2684 = vmatpush.msra.mxu2 %v204_v23  ;;  %v2222_v23 = vld [vmem:[%s4949_s2 + $0xf0] sm:$0xff] }
  0xfa   :  { %254 = vmatpush.msrb.mxu0 %v201_v25  ;;  %2685 = vmatpush.msra.mxu2 %v201_v25  ;;  %v2247_v25 = vld [vmem:[%s4949_s2 + $0x1b8] sm:$0xff] }
  0xfc   :  { %255 = vmatpush.msrb.mxu0 %v198_v27  ;;  %2686 = vmatpush.msra.mxu2 %v198_v27  ;;  %v2244_v27 = vld [vmem:[%s4949_s2 + $0x1a0] sm:$0xff] }
  0xfe   :  { %256 = vmatpush.msrb.mxu0 %v195_v28  ;;  %2687 = vmatpush.msra.mxu2 %v195_v28  ;;  %v2243_v28 = vld [vmem:[%s4949_s2 + $0x198] sm:$0xff] }
 0x100   :  { %257 = vmatpush.msrb.mxu0 %v192_v30  ;;  %2688 = vmatpush.msra.mxu2 %v192_v30  ;;  %v2241_v30 = vld [vmem:[%s4949_s2 + $0x188] sm:$0xff] }
 0x101   :  { %2218 = vmatmul.msk.f32.vlgmr.msra.gmra.mxu2 %vm223_vm1, %v3085_v56  ;;  %2216 = vmatmul.msk.f32.vlgmr.msrb.gmra.mxu0 %vm223_vm1, %v3096_v52 }
 0x102   :  { %482 = vmatpush.msra.mxu0 %v2284_v54  ;;  %314 = vmatpush.msrb.mxu2 %v2237_v55  ;;  %v2240_v54 = vld [vmem:[%s4949_s2 + $0x180] sm:$0xff]  ;;  %v2239_v55 = vld [vmem:[%s4949_s2 + $0x178] sm:$0xff] }
 0x104   :  { %483 = vmatpush.msra.mxu0 %v2283_v50  ;;  %315 = vmatpush.msrb.mxu2 %v2236_v51  ;;  %v2238_v50 = vld [vmem:[%s4949_s2 + $0x170] sm:$0xff] }
 0x106   :  { %484 = vmatpush.msra.mxu0 %v2282_v53  ;;  %316 = vmatpush.msrb.mxu2 %v2235_v57 }
 0x108   :  { %485 = vmatpush.msra.mxu0 %v2281_v58  ;;  %317 = vmatpush.msrb.mxu2 %v2234_v59 }
 0x109   :  { %2219 = vmatmul.msk.f32.gmra.mxu2 %vm223_vm1, %v3125_v60  ;;  %2217 = vmatmul.msk.f32.gmra.mxu0 %vm223_vm1, %v3136_v63 }
 0x10a   :  { %486 = vmatpush.msra.mxu0 %v2280_v61  ;;  %318 = vmatpush.msrb.mxu2 %v2233_v62 }
 0x10c   :  { %487 = vmatpush.msra.mxu0 %v2279_v0  ;;  %319 = vmatpush.msrb.mxu2 %v2232_v1 }
 0x10e   :  { %488 = vmatpush.msra.mxu0 %v2278_v2  ;;  %320 = vmatpush.msrb.mxu2 %v2231_v3 }
 0x110   :  { %489 = vmatpush.msra.mxu0 %v2277_v4  ;;  %321 = vmatpush.msrb.mxu2 %v2230_v5 }
 0x111   :  { %2220 = vmatmul.msk.f32.gmra.mxu2 %vm223_vm1, %v3165_v6 }
 0x112   :  { %490 = vmatpush.msra.mxu0 %v2276_v7  ;;  %322 = vmatpush.msrb.mxu2 %v2229_v8 }
 0x114   :  { %491 = vmatpush.msra.mxu0 %v2275_v9  ;;  %323 = vmatpush.msrb.mxu2 %v2228_v10 }
 0x116   :  { %492 = vmatpush.msra.mxu0 %v2274_v11  ;;  %324 = vmatpush.msrb.mxu2 %v2227_v12 }
 0x118   :  { %493 = vmatpush.msra.mxu0 %v2273_v13  ;;  %325 = vmatpush.msrb.mxu2 %v2226_v14 }
 0x119   :  { %2221 = vmatmul.msk.f32.gmra.mxu2 %vm223_vm1, %v3198_v15 }
 0x11a   :  { %494 = vmatpush.msra.mxu0 %v2272_v16  ;;  %326 = vmatpush.msrb.mxu2 %v2225_v17 }
 0x11c   :  { %495 = vmatpush.msra.mxu0 %v2271_v18  ;;  %327 = vmatpush.msrb.mxu2 %v2224_v19 }
 0x11e   :  { %496 = vmatpush.msra.mxu0 %v2270_v20  ;;  %328 = vmatpush.msrb.mxu2 %v2223_v21 }
 0x120   :  { %497 = vmatpush.msra.mxu0 %v2269_v22  ;;  %329 = vmatpush.msrb.mxu2 %v2222_v23 }
 0x121   :  { %498 = vmatmul.f32.vlgmr.msra.gmra.mxu0 %v2898_v31  ;;  %330 = vmatmul.f32.vlgmr.msrb.gmra.mxu2 %v2898_v31  ;;  %v2250_v31 = vld [vmem:[%s4949_s2 + $0x1d0] sm:$0xff] }
 0x122   :  { %363 = vmatpush.msra.mxu2 %v2251_v24 }
 0x124   :  { %364 = vmatpush.msra.mxu2 %v2250_v31 }
 0x129   :  { %501 = vmatmul.f32.gmra.mxu0 %v2911_v33  ;;  %333 = vmatmul.f32.gmra.mxu2 %v2911_v33  ;;  %v2249_v33 = vld [vmem:[%s4949_s2 + $0x1c8] sm:$0xff] }
 0x12a   :  { %365 = vmatpush.msra.mxu2 %v2249_v33 }
 0x131   :  { %504 = vmatmul.f32.gmra.mxu0 %v2924_v35  ;;  %336 = vmatmul.f32.gmra.mxu2 %v2924_v35  ;;  %v2248_v35 = vld [vmem:[%s4949_s2 + $0x1c0] sm:$0xff] }
 0x132   :  { %366 = vmatpush.msra.mxu2 %v2248_v35  ;;  %v2331_v35 = vld [vmem:[%s4951_s4 + $0x1f8] sm:$0xff] }
 0x134   :  { %367 = vmatpush.msra.mxu2 %v2247_v25  ;;  %v2330_v25 = vld [vmem:[%s4951_s4 + $0x1f0] sm:$0xff] }
 0x139   :  { %507 = vmatmul.f32.gmra.mxu0 %v2937_v37  ;;  %339 = vmatmul.f32.gmra.mxu2 %v2937_v37  ;;  %v2246_v37 = vld [vmem:[%s4949_s2 + $0x1b0] sm:$0xff] }
 0x13a   :  { %368 = vmatpush.msra.mxu2 %v2246_v37 }
 0x13c   :  { %369 = vmatpush.msra.mxu2 %v2245_v26  ;;  %v2329_v26 = vld [vmem:[%s4951_s4 + $0x1e8] sm:$0xff] }
 0x13e   :  { %370 = vmatpush.msra.mxu2 %v2244_v27  ;;  %v2328_v27 = vld [vmem:[%s4951_s4 + $0x1e0] sm:$0xff] }
 0x140   :  { %371 = vmatpush.msra.mxu2 %v2243_v28  ;;  %v2327_v28 = vld [vmem:[%s4951_s4 + $0x1d8] sm:$0xff] }
 0x141   :  { %510 = vmatmul.f32.gmra.mxu0 %v2950_v39  ;;  %342 = vmatmul.f32.gmra.mxu2 %v2950_v39  ;;  %v2242_v39 = vld [vmem:[%s4949_s2 + $0x190] sm:$0xff]  ;;  %s2262_s2 = sld [smem:[#allocation3 + $0x1]] }
 0x142   :  { %372 = vmatpush.msra.mxu2 %v2242_v39  ;;  %v2326_v39 = vld [vmem:[%s4951_s4 + $0x1d0] sm:$0xff] }
 0x144   :  { %373 = vmatpush.msra.mxu2 %v2241_v30 }
 0x146   :  { %374 = vmatpush.msra.mxu2 %v2240_v54  ;;  %v2325_v54 = vld [vmem:[%s4951_s4 + $0x1c8] sm:$0xff] }
 0x148   :  { %375 = vmatpush.msra.mxu2 %v2239_v55  ;;  %v2324_v55 = vld [vmem:[%s4951_s4 + $0x1c0] sm:$0xff] }
 0x149   :  { %513 = vmatmul.f32.gmra.mxu0 %v2963_v41  ;;  %345 = vmatmul.f32.gmra.mxu2 %v2963_v41 }
 0x14a   :  { %376 = vmatpush.msra.mxu2 %v2238_v50  ;;  %v2323_v50 = vld [vmem:[%s4951_s4 + $0x1b8] sm:$0xff] }
 0x151   :  { %516 = vmatmul.f32.gmra.mxu0 %v2976_v43  ;;  %348 = vmatmul.f32.gmra.mxu2 %v2976_v43 }
 0x159   :  { %519 = vmatmul.f32.gmra.mxu0 %v2989_v45  ;;  %351 = vmatmul.f32.gmra.mxu2 %v2989_v45  ;;  %v546_v45 = vpop.f32.mrf.mxu3 }
 0x161   :  { %522 = vmatmul.f32.gmra.mxu0 %v3002_v47  ;;  %354 = vmatmul.f32.gmra.mxu2 %v3002_v47 }
 0x169   :  { %525 = vmatmul.f32.gmra.mxu0 %v3015_v49  ;;  %357 = vmatmul.f32.gmra.mxu2 %v3015_v49  ;;  %v549_v49 = vpop.f32.mrf.mxu3 }
 0x171   :  { %2252 = vmatmul.msk.f32.vlgmr.msra.gmra.mxu2 %vm96_vm0, %v2890_v29 }
 0x179   :  { %2253 = vmatmul.msk.f32.gmra.mxu2 %vm96_vm0, %v2906_v32 }
 0x17e   :  { %v3310_v43 = vpop.f32.mrf.mxu0 }
 0x181   :  { %2254 = vmatmul.msk.f32.gmra.mxu2 %vm96_vm0, %v2919_v34 }
 0x184   :  { %v3306_v41 = vpop.f32.mrf.mxu2 }
 0x186   :  { %v3316_v29 = vpop.f32.mrf.mxu0 }
 0x189   :  { %2255 = vmatmul.msk.f32.gmra.mxu2 %vm96_vm0, %v2932_v36  ;;  %v552_v36 = vpop.f32.mrf.mxu3 }
 0x18c   :  { %v3312_v47 = vpop.f32.mrf.mxu2 }
 0x191   :  { %2256 = vmatmul.msk.f32.gmra.mxu2 %vm96_vm0, %v2945_v38  ;;  %v555_v58 = vpop.f32.mrf.mxu3 }
 0x194   :  { %v3318_v32 = vpop.f32.mrf.mxu2 }
 0x199   :  { %2257 = vmatmul.msk.f32.gmra.mxu2 %vm96_vm0, %v2958_v40  ;;  %v558_v40 = vpop.f32.mrf.mxu3 }
 0x19c   :  { %v3322_v34 = vpop.f32.mrf.mxu2 }
 0x19e   :  { %v499_v51 = vpop.f32.mrf.mxu0 }
 0x19f   :  { %v547_v33 = vadd.f32 %v546_v45, %v499_v51  ;;  %v2322_v45 = vld [vmem:[%s4951_s4 + $0x1b0] sm:$0xff]  ;;  %v2321_v51 = vld [vmem:[%s4951_s4 + $0x1a8] sm:$0xff] }
 0x1a1   :  { %2258 = vmatmul.msk.f32.gmra.mxu2 %vm96_vm0, %v2971_v42  ;;  %v561_v42 = vpop.f32.mrf.mxu3 }
 0x1a4   :  { %v3326_v53 = vpop.f32.mrf.mxu2 }
 0x1a6   :  { %v502_v57 = vpop.f32.mrf.mxu0 }
 0x1a7   :  { %v550_v24 = vadd.f32 %v549_v49, %v502_v57  ;;  %v2319_v57 = vld [vmem:[%s4951_s4 + $0x198] sm:$0xff] }
 0x1a9   :  { %2259 = vmatmul.msk.f32.gmra.mxu2 %vm96_vm0, %v2984_v44  ;;  %v564_v3 = vpop.f32.mrf.mxu3 }
 0x1ac   :  { %v3330_v38 = vpop.f32.mrf.mxu2 }
 0x1ae   :  { %v505_v59 = vpop.f32.mrf.mxu0 }
 0x1af   :  { %v553_v23 = vadd.f32 %v552_v36, %v505_v59  ;;  %v2320_v36 = vld [vmem:[%s4951_s4 + $0x1a0] sm:$0xff] }
 0x1b1   :  { %2260 = vmatmul.msk.f32.gmra.mxu2 %vm96_vm0, %v2997_v46  ;;  %v567_v7 = vpop.f32.mrf.mxu3 }
 0x1b4   :  { %v3334_v61 = vpop.f32.mrf.mxu2 }
 0x1b6   :  { %v508_v62 = vpop.f32.mrf.mxu0 }
 0x1b7   :  { %v556_v22 = vadd.f32 %v555_v58, %v508_v62  ;;  %v2318_v58 = vld [vmem:[%s4951_s4 + $0x190] sm:$0xff]  ;;  %v2316_v62 = vld [vmem:[%s4951_s4 + $0x180] sm:$0xff] }
 0x1b9   :  { %2261 = vmatmul.msk.f32.gmra.mxu2 %vm96_vm0, %v3010_v48  ;;  %v570_v9 = vpop.f32.mrf.mxu3 }
 0x1bc   :  { %v3338_v0 = vpop.f32.mrf.mxu2 }
 0x1be   :  { %v511_v1 = vpop.f32.mrf.mxu0 }
 0x1bf   :  { %v559_v21 = vadd.f32 %v558_v40, %v511_v1  ;;  %v2317_v40 = vld [vmem:[%s4951_s4 + $0x188] sm:$0xff]  ;;  %v222_v1 = vstv %s221_s14 }
 0x1c1   :  { %v573_v48 = vpop.f32.mrf.mxu3 }
 0x1c4   :  { %v3340_v2 = vpop.f32.mrf.mxu2 }
 0x1c6   :  { %v514_v44 = vpop.f32.mrf.mxu0 }
 0x1c7   :  { %v562_v19 = vadd.f32 %v561_v42, %v514_v44  ;;  %v260_v44 = vadd.f32 %v3310_v43, %v222_v1 }
 0x1c9   :  { %2706 = vtanh.f32 %v260_v44  ;;  %v658_v44 = vld [vmem:[%s4951_s4 + $0x138] sm:$0xff] }
 0x1cc   :  { %v3342_v4 = vpop.f32.mrf.mxu2 }
 0x1ce   :  { %v517_v5 = vpop.f32.mrf.mxu0 }
 0x1cf   :  { %v565_v18 = vadd.f32 %v564_v3, %v517_v5  ;;  %v263_v5 = vadd.f32 %v3316_v29, %v222_v1 }
 0x1d1   :  { %2708 = vtanh.f32 %v263_v5  ;;  %v2341_v5 = vld [vmem:[%s4951_s4 + $0x248] sm:$0xff] }
 0x1d4   :  { %v3344_v46 = vpop.f32.mrf.mxu2 }
 0x1d6   :  { %v520_v8 = vpop.f32.mrf.mxu0 }
 0x1d7   :  { %v568_v17 = vadd.f32 %v567_v7, %v520_v8  ;;  %v3420_v7 = vpop.eup %2706 }
 0x1dc   :  { %v3346_v10 = vpop.f32.mrf.mxu2 }
 0x1de   :  { %v523_v11 = vpop.f32.mrf.mxu0 }
 0x1df   :  { %v571_v14 = vadd.f32 %v570_v9, %v523_v11  ;;  %v266_v9 = vadd.f32 %v3306_v41, %v222_v1  ;;  %v3424_v11 = vpop.eup %2708  ;;  %v272_v41 = vadd.f32 %v3318_v32, %v222_v1 }
 0x1e1   :  { %2710 = vtanh.f32 %v266_v9  ;;  %v657_v9 = vld [vmem:[%s4951_s4 + $0x130] sm:$0xff] }
 0x1e4   :  { %v3348_v12 = vpop.f32.mrf.mxu2 }
 0x1e6   :  { %v526_v13 = vpop.f32.mrf.mxu0 }
 0x1e7   :  { %v574_v16 = vadd.f32 %v573_v48, %v526_v13  ;;  %v269_v48 = vadd.f32 %v3312_v47, %v222_v1  ;;  %v3428_v13 = vpop.eup %2710 }
 0x1e9   :  { %584 = vmatpush.msrb.mxu2 %v574_v16  ;;  %2712 = vtanh.f32 %v269_v48 }
 0x1ea   :  { %2714 = vtanh.f32 %v272_v41  ;;  %v2339_v41 = vld [vmem:[%s4951_s4 + $0x238] sm:$0xff] }
 0x1eb   :  { %585 = vmatpush.msrb.mxu2 %v571_v14 }
 0x1ec   :  { %v3350_v20 = vpop.f32.mrf.mxu2 }
 0x1ed   :  { %586 = vmatpush.msrb.mxu2 %v568_v17 }
 0x1ef   :  { %587 = vmatpush.msrb.mxu2 %v565_v18  ;;  %v3435_v18 = vpop.eup %2712 }
 0x1f1   :  { %588 = vmatpush.msrb.mxu2 %v562_v19 }
 0x1f3   :  { %589 = vmatpush.msrb.mxu2 %v559_v21  ;;  %v629_v21 = vld [vmem:[%s4951_s4 + $0x50] sm:$0xff] }
 0x1f4   :  { %v3352_v31 = vpop.f32.mrf.mxu2 }
 0x1f5   :  { %590 = vmatpush.msrb.mxu2 %v556_v22  ;;  %v628_v22 = vld [vmem:[%s4951_s4 + $0x48] sm:$0xff] }
 0x1f7   :  { %591 = vmatpush.msrb.mxu2 %v553_v23  ;;  %v627_v23 = vld [vmem:[%s4951_s4 + $0x40] sm:$0xff] }
 0x1f9   :  { %592 = vmatpush.msrb.mxu2 %v550_v24  ;;  %v626_v24 = vld [vmem:[%s4951_s4 + $0x38] sm:$0xff] }
 0x1fb   :  { %593 = vmatpush.msrb.mxu2 %v547_v33  ;;  %v623_v33 = vld [vmem:[%s4951_s4 + $0x20] sm:$0xff] }
 0x1fc   :  { %2310 = vmatmul.msk.f32.vlgmr.msrb.gmra.mxu2 %vm223_vm1, %v3096_v52  ;;  %v3362_v37 = vpop.f32.mrf.mxu2 }
 0x1fd   :  { %839 = vmatpush.msra.mxu2 %v2331_v35  ;;  %v622_v35 = vld [vmem:[%s4951_s4 + $0x18] sm:$0xff] }
 0x1ff   :  { %840 = vmatpush.msra.mxu2 %v2330_v25  ;;  %v620_v25 = vld [vmem:[%s4951_s4 + $0x8] sm:$0xff] }
 0x201   :  { %841 = vmatpush.msra.mxu2 %v2329_v26  ;;  %v665_v26 = vld [vmem:[%s4951_s4 + $0x170] sm:$0xff] }
 0x203   :  { %842 = vmatpush.msra.mxu2 %v2328_v27  ;;  %v2347_v27 = vld [vmem:[%s4951_s4 + $0x278] sm:$0xff] }
 0x204   :  { %2311 = vmatmul.msk.f32.gmra.mxu2 %vm223_vm1, %v3136_v63  ;;  %v3378_v30 = vpop.f32.mrf.mxu2 }
 0x205   :  { %843 = vmatpush.msra.mxu2 %v2327_v28  ;;  %v649_v28 = vld [vmem:[%s4951_s4 + $0xf0] sm:$0xff] }
 0x207   :  { %844 = vmatpush.msra.mxu2 %v2326_v39  ;;  %v663_v39 = vld [vmem:[%s4951_s4 + $0x160] sm:$0xff] }
 0x209   :  { %845 = vmatpush.msra.mxu2 %v2325_v54  ;;  %v648_v54 = vld [vmem:[%s4951_s4 + $0xe8] sm:$0xff] }
 0x20b   :  { %846 = vmatpush.msra.mxu2 %v2324_v55  ;;  %v662_v55 = vld [vmem:[%s4951_s4 + $0x158] sm:$0xff] }
 0x20c   :  { %2312 = vmatmul.msk.f32.gmra.mxu2 %vm223_vm1, %v3085_v56  ;;  %v387_v49 = vpop.f32.mrf.mxu2 }
 0x20d   :  { %847 = vmatpush.msra.mxu2 %v2323_v50  ;;  %v388_v32 = vadd.f32 %v387_v49, %v3338_v0  ;;  %v634_v0 = vld [vmem:[%s4951_s4 + $0x78] sm:$0xff]  ;;  %v647_v49 = vld [vmem:[%s4951_s4 + $0xe0] sm:$0xff] }
 0x20f   :  { %848 = vmatpush.msra.mxu2 %v2322_v45  ;;  %v2345_v45 = vld [vmem:[%s4951_s4 + $0x268] sm:$0xff] }
 0x211   :  { %849 = vmatpush.msra.mxu2 %v2321_v51  ;;  %v661_v51 = vld [vmem:[%s4951_s4 + $0x150] sm:$0xff] }
 0x213   :  { %850 = vmatpush.msra.mxu2 %v2320_v36  ;;  %v2344_v36 = vld [vmem:[%s4951_s4 + $0x260] sm:$0xff] }
 0x214   :  { %2313 = vmatmul.msk.f32.gmra.mxu2 %vm223_vm1, %v3125_v60  ;;  %v390_v59 = vpop.f32.mrf.mxu2 }
 0x215   :  { %851 = vmatpush.msra.mxu2 %v2319_v57  ;;  %v646_v57 = vld [vmem:[%s4951_s4 + $0xd8] sm:$0xff] }
 0x217   :  { %852 = vmatpush.msra.mxu2 %v2318_v58  ;;  %v660_v58 = vld [vmem:[%s4951_s4 + $0x148] sm:$0xff] }
 0x219   :  { %853 = vmatpush.msra.mxu2 %v2317_v40  ;;  %v645_v40 = vld [vmem:[%s4951_s4 + $0xd0] sm:$0xff] }
 0x21b   :  { %854 = vmatpush.msra.mxu2 %v2316_v62  ;;  %v659_v62 = vld [vmem:[%s4951_s4 + $0x140] sm:$0xff] }
 0x21c   :  { %2314 = vmatmul.msk.f32.gmra.mxu2 %vm223_vm1, %v3165_v6  ;;  %v393_v42 = vpop.f32.mrf.mxu2 }
 0x21d   :  { %v394_v19 = vadd.f32 %v393_v42, %v3342_v4  ;;  %v382_v4 = vadd.f32 %v3362_v37, %v3330_v38  ;;  %v631_v38 = vld [vmem:[%s4951_s4 + $0x60] sm:$0xff]  ;;  %v2342_v42 = vld [vmem:[%s4951_s4 + $0x250] sm:$0xff] }
 0x21e   :  { %v619_v37 = vld [vmem:[%s4951_s4] sm:$0xff] }
 0x224   :  { %2315 = vmatmul.msk.f32.gmra.mxu2 %vm223_vm1, %v3198_v15  ;;  %v396_v3 = vpop.f32.mrf.mxu2 }
 0x225   :  { %v397_v47 = vadd.f32 %v396_v3, %v3344_v46  ;;  %v385_v46 = vadd.f32 %v3378_v30, %v3334_v61  ;;  %v633_v61 = vld [vmem:[%s4951_s4 + $0x70] sm:$0xff]  ;;  %v3586_v3 = vstv %s2309_s15 }
 0x226   :  { %v2346_v30 = vld [vmem:[%s4951_s4 + $0x270] sm:$0xff] }
 0x22c   :  { %855 = vmatmul.f32.vlgmr.msra.gmra.mxu2 %v3420_v7  ;;  %v399_v8 = vpop.f32.mrf.mxu2 }
 0x22d   :  { %v400_v17 = vadd.f32 %v399_v8, %v3346_v10  ;;  %v3443_v10 = vpop.eup %2714  ;;  %v643_v8 = vld [vmem:[%s4951_s4 + $0xc0] sm:$0xff] }
 0x234   :  { %858 = vmatmul.f32.gmra.mxu2 %v3424_v11  ;;  %v402_v43 = vpop.f32.mrf.mxu2 }
 0x235   :  { %v403_v16 = vadd.f32 %v402_v43, %v3348_v12  ;;  %v275_v12 = vadd.f32 %v3322_v34, %v222_v1  ;;  %v379_v34 = vadd.f32 %v3352_v31, %v3326_v53  ;;  %v632_v53 = vld [vmem:[%s4951_s4 + $0x68] sm:$0xff]  ;;  %v2340_v43 = vld [vmem:[%s4951_s4 + $0x240] sm:$0xff] }
 0x236   :  { %v624_v31 = vld [vmem:[%s4951_s4 + $0x28] sm:$0xff] }
 0x237   :  { %2716 = vtanh.f32 %v275_v12  ;;  %v644_v1 = vld [vmem:[%s4951_s4 + $0xc8] sm:$0xff]  ;;  %v654_v12 = vld [vmem:[%s4951_s4 + $0x118] sm:$0xff] }
 0x23c   :  { %861 = vmatmul.f32.gmra.mxu2 %v3428_v13  ;;  %v405_v29 = vpop.f32.mrf.mxu2 }
 0x23d   :  { %v406_v14 = vadd.f32 %v405_v29, %v3350_v20  ;;  %v391_v20 = vadd.f32 %v390_v59, %v3340_v2  ;;  %v3455_v2 = vpop.eup %2716  ;;  %v2343_v59 = vld [vmem:[%s4951_s4 + $0x258] sm:$0xff] }
 0x23e   :  { %v642_v29 = vld [vmem:[%s4951_s4 + $0xb8] sm:$0xff] }
 0x23f   :  { %416 = vmatpush.msrb.mxu1 %v406_v14  ;;  %v656_v14 = vld [vmem:[%s4951_s4 + $0x128] sm:$0xff] }
 0x241   :  { %417 = vmatpush.msrb.mxu1 %v403_v16 }
 0x243   :  { %418 = vmatpush.msrb.mxu1 %v400_v17  ;;  %v641_v17 = vld [vmem:[%s4951_s4 + $0xb0] sm:$0xff] }
 0x244   :  { %864 = vmatmul.f32.gmra.mxu2 %v3435_v18 }
 0x245   :  { %419 = vmatpush.msrb.mxu1 %v397_v47  ;;  %v655_v47 = vld [vmem:[%s4951_s4 + $0x120] sm:$0xff] }
 0x247   :  { %420 = vmatpush.msrb.mxu1 %v394_v19  ;;  %v2338_v19 = vld [vmem:[%s4951_s4 + $0x230] sm:$0xff] }
 0x249   :  { %421 = vmatpush.msrb.mxu1 %v391_v20  ;;  %v640_v20 = vld [vmem:[%s4951_s4 + $0xa8] sm:$0xff] }
 0x24b   :  { %422 = vmatpush.msrb.mxu1 %v388_v32  ;;  %v2337_v32 = vld [vmem:[%s4951_s4 + $0x228] sm:$0xff] }
 0x24c   :  { %867 = vmatmul.f32.gmra.mxu2 %v3443_v10 }
 0x24d   :  { %423 = vmatpush.msrb.mxu1 %v385_v46  ;;  %v639_v46 = vld [vmem:[%s4951_s4 + $0xa0] sm:$0xff] }
 0x24f   :  { %424 = vmatpush.msrb.mxu1 %v382_v4  ;;  %v653_v4 = vld [vmem:[%s4951_s4 + $0x110] sm:$0xff] }
 0x251   :  { %425 = vmatpush.msrb.mxu1 %v379_v34  ;;  %v2336_v34 = vld [vmem:[%s4951_s4 + $0x220] sm:$0xff] }
 0x252   :  { %2263 = vmatmul.msk.f32.vlgmr.msrb.gmra.mxu1 %vm223_vm1, %v3096_v52  ;;  %v630_v52 = vld [vmem:[%s4951_s4 + $0x58] sm:$0xff] }
 0x253   :  { %667 = vmatpush.msra.mxu1 %v634_v0 }
 0x254   :  { %870 = vmatmul.f32.gmra.mxu2 %v3455_v2 }
 0x255   :  { %668 = vmatpush.msra.mxu1 %v633_v61 }
 0x257   :  { %669 = vmatpush.msra.mxu1 %v632_v53  ;;  %v638_v53 = vld [vmem:[%s4951_s4 + $0x98] sm:$0xff] }
 0x259   :  { %670 = vmatpush.msra.mxu1 %v631_v38  ;;  %v652_v38 = vld [vmem:[%s4951_s4 + $0x108] sm:$0xff] }
 0x25a   :  { %2264 = vmatmul.msk.f32.gmra.mxu1 %vm223_vm1, %v3136_v63  ;;  %v625_v63 = vld [vmem:[%s4951_s4 + $0x30] sm:$0xff] }
 0x25b   :  { %671 = vmatpush.msra.mxu1 %v630_v52  ;;  %v2335_v52 = vld [vmem:[%s4951_s4 + $0x218] sm:$0xff] }
 0x25d   :  { %672 = vmatpush.msra.mxu1 %v629_v21 }
 0x25f   :  { %673 = vmatpush.msra.mxu1 %v628_v22  ;;  %v637_v22 = vld [vmem:[%s4951_s4 + $0x90] sm:$0xff] }
 0x261   :  { %674 = vmatpush.msra.mxu1 %v627_v23  ;;  %v651_v23 = vld [vmem:[%s4951_s4 + $0x100] sm:$0xff] }
 0x262   :  { %2265 = vmatmul.msk.f32.gmra.mxu1 %vm223_vm1, %v3085_v56  ;;  %v621_v56 = vld [vmem:[%s4951_s4 + $0x10] sm:$0xff] }
 0x263   :  { %675 = vmatpush.msra.mxu1 %v626_v24  ;;  %v2334_v24 = vld [vmem:[%s4951_s4 + $0x210] sm:$0xff] }
 0x265   :  { %676 = vmatpush.msra.mxu1 %v625_v63  ;;  %v636_v63 = vld [vmem:[%s4951_s4 + $0x88] sm:$0xff] }
 0x267   :  { %677 = vmatpush.msra.mxu1 %v624_v31  ;;  %v2333_v31 = vld [vmem:[%s4951_s4 + $0x208] sm:$0xff] }
 0x269   :  { %678 = vmatpush.msra.mxu1 %v623_v33  ;;  %v635_v33 = vld [vmem:[%s4951_s4 + $0x80] sm:$0xff] }
 0x26a   :  { %2266 = vmatmul.msk.f32.gmra.mxu1 %vm223_vm1, %v3125_v60  ;;  %v666_v60 = vld [vmem:[%s4951_s4 + $0x178] sm:$0xff] }
 0x26b   :  { %679 = vmatpush.msra.mxu1 %v622_v35  ;;  %737 = vmatpush.msrb.mxu3 %v666_v60  ;;  %v2332_v35 = vld [vmem:[%s4951_s4 + $0x200] sm:$0xff] }
 0x26d   :  { %680 = vmatpush.msra.mxu1 %v621_v56  ;;  %738 = vmatpush.msrb.mxu3 %v665_v26 }
 0x26f   :  { %681 = vmatpush.msra.mxu1 %v620_v25 }
 0x271   :  { %682 = vmatpush.msra.mxu1 %v619_v37 }
 0x272   :  { %2267 = vmatmul.msk.f32.gmra.mxu1 %vm223_vm1, %v3165_v6  ;;  %v650_v6 = vld [vmem:[%s4951_s4 + $0xf8] sm:$0xff] }
 0x273   :  { %702 = vmatpush.msrb.mxu0 %v650_v6  ;;  %874 = vmatpush.msrb.mxu1 %v2347_v27  ;;  %v2363_v27 = vld [vmem:[%s4951_s4 + $0x2f8] sm:$0xff] }
 0x275   :  { %703 = vmatpush.msrb.mxu0 %v649_v28  ;;  %875 = vmatpush.msrb.mxu1 %v2346_v30  ;;  %v2433_v28 = vld [vmem:[%s4951_s4 + $0x378] sm:$0xff]  ;;  %v2362_v30 = vld [vmem:[%s4951_s4 + $0x2f0] sm:$0xff] }
 0x277   :  { %704 = vmatpush.msrb.mxu0 %v648_v54  ;;  %876 = vmatpush.msrb.mxu1 %v2345_v45  ;;  %v2432_v54 = vld [vmem:[%s4951_s4 + $0x370] sm:$0xff]  ;;  %v3701_v45 = vstv %s2262_s2 }
 0x279   :  { %705 = vmatpush.msrb.mxu0 %v647_v49  ;;  %877 = vmatpush.msrb.mxu1 %v2344_v36  ;;  %v2360_v36 = vld [vmem:[%s4951_s4 + $0x2e0] sm:$0xff] }
 0x27a   :  { %2268 = vmatmul.msk.f32.gmra.mxu1 %vm223_vm1, %v3198_v15  ;;  %v664_v15 = vld [vmem:[%s4951_s4 + $0x168] sm:$0xff] }
 0x27b   :  { %739 = vmatpush.msrb.mxu3 %v664_v15  ;;  %706 = vmatpush.msrb.mxu0 %v646_v57  ;;  %v2430_v57 = vld [vmem:[%s4951_s4 + $0x360] sm:$0xff] }
 0x27c   :  { %878 = vmatpush.msrb.mxu1 %v2343_v59 }
 0x27d   :  { %740 = vmatpush.msrb.mxu3 %v663_v39  ;;  %707 = vmatpush.msrb.mxu0 %v645_v40  ;;  %v2359_v40 = vld [vmem:[%s4951_s4 + $0x2d8] sm:$0xff] }
 0x27e   :  { %879 = vmatpush.msrb.mxu1 %v2342_v42 }
 0x27f   :  { %v595_v50 = vpop.f32.mrf.mxu2  ;;  %741 = vmatpush.msrb.mxu3 %v662_v55  ;;  %708 = vmatpush.msrb.mxu0 %v644_v1  ;;  %v2361_v55 = vld [vmem:[%s4951_s4 + $0x2e8] sm:$0xff]  ;;  %v2358_v1 = vld [vmem:[%s4951_s4 + $0x2d0] sm:$0xff] }
 0x280   :  { %880 = vmatpush.msrb.mxu1 %v2341_v5  ;;  %v596_v16 = vadd.f32 %v595_v50, %v3586_v3  ;;  %v2431_v50 = vld [vmem:[%s4951_s4 + $0x368] sm:$0xff] }
 0x281   :  { %742 = vmatpush.msrb.mxu3 %v661_v51  ;;  %709 = vmatpush.msrb.mxu0 %v643_v8  ;;  %v2427_v5 = vld [vmem:[%s4951_s4 + $0x348] sm:$0xff] }
 0x282   :  { %683 = vmatmul.f32.vlgmr.msra.gmra.mxu1 %v3420_v7  ;;  %2718 = vtanh.f32 %v596_v16  ;;  %v2425_v16 = vld [vmem:[%s4951_s4 + $0x338] sm:$0xff] }
 0x283   :  { %743 = vmatpush.msrb.mxu3 %v660_v58  ;;  %881 = vmatpush.msrb.mxu1 %v2340_v43  ;;  %v2426_v43 = vld [vmem:[%s4951_s4 + $0x340] sm:$0xff] }
 0x284   :  { %710 = vmatpush.msrb.mxu0 %v642_v29 }
 0x285   :  { %744 = vmatpush.msrb.mxu3 %v659_v62  ;;  %882 = vmatpush.msrb.mxu1 %v2339_v41  ;;  %v2429_v62 = vld [vmem:[%s4951_s4 + $0x358] sm:$0xff] }
 0x286   :  { %711 = vmatpush.msrb.mxu0 %v641_v17  ;;  %v2354_v17 = vld [vmem:[%s4951_s4 + $0x2b0] sm:$0xff] }
 0x287   :  { %745 = vmatpush.msrb.mxu3 %v658_v44  ;;  %v598_v48 = vpop.f32.mrf.mxu2  ;;  %883 = vmatpush.msrb.mxu1 %v2338_v19  ;;  %v2428_v44 = vld [vmem:[%s4951_s4 + $0x350] sm:$0xff]  ;;  %v2353_v19 = vld [vmem:[%s4951_s4 + $0x2a8] sm:$0xff] }
 0x288   :  { %712 = vmatpush.msrb.mxu0 %v640_v20  ;;  %v599_v0 = vadd.f32 %v598_v48, %v3586_v3  ;;  %v3648_v21 = vpop.eup %2718  ;;  %v2423_v20 = vld [vmem:[%s4951_s4 + $0x328] sm:$0xff] }
 0x289   :  { %746 = vmatpush.msrb.mxu3 %v657_v9  ;;  %884 = vmatpush.msrb.mxu1 %v2337_v32  ;;  %v2356_v9 = vld [vmem:[%s4951_s4 + $0x2c0] sm:$0xff] }
 0x28a   :  { %686 = vmatmul.f32.gmra.mxu1 %v3424_v11  ;;  %713 = vmatpush.msrb.mxu0 %v639_v46  ;;  %2720 = vtanh.f32 %v599_v0  ;;  %v2352_v32 = vld [vmem:[%s4951_s4 + $0x2a0] sm:$0xff]  ;;  %v2351_v0 = vld [vmem:[%s4951_s4 + $0x298] sm:$0xff] }
 0x28b   :  { %747 = vmatpush.msrb.mxu3 %v656_v14  ;;  %885 = vmatpush.msrb.mxu1 %v2336_v34  ;;  %v2355_v14 = vld [vmem:[%s4951_s4 + $0x2b8] sm:$0xff]  ;;  %v2422_v46 = vld [vmem:[%s4951_s4 + $0x320] sm:$0xff] }
 0x28c   :  { %714 = vmatpush.msrb.mxu0 %v638_v53  ;;  %v2350_v53 = vld [vmem:[%s4951_s4 + $0x290] sm:$0xff] }
 0x28d   :  { %748 = vmatpush.msrb.mxu3 %v655_v47  ;;  %886 = vmatpush.msrb.mxu1 %v2335_v52  ;;  %v2424_v47 = vld [vmem:[%s4951_s4 + $0x330] sm:$0xff]  ;;  %v2349_v52 = vld [vmem:[%s4951_s4 + $0x288] sm:$0xff] }
 0x28e   :  { %715 = vmatpush.msrb.mxu0 %v637_v22  ;;  %v2419_v22 = vld [vmem:[%s4951_s4 + $0x308] sm:$0xff] }
 0x28f   :  { %749 = vmatpush.msrb.mxu3 %v654_v12  ;;  %v601_v61 = vpop.f32.mrf.mxu2  ;;  %887 = vmatpush.msrb.mxu1 %v2334_v24  ;;  %v2348_v24 = vld [vmem:[%s4951_s4 + $0x280] sm:$0xff] }
 0x290   :  { %716 = vmatpush.msrb.mxu0 %v636_v63  ;;  %v602_v56 = vadd.f32 %v601_v61, %v3586_v3  ;;  %v3673_v25 = vpop.eup %2720  ;;  %v2421_v61 = vld [vmem:[%s4951_s4 + $0x318] sm:$0xff]  ;;  %v2418_v63 = vld [vmem:[%s4951_s4 + $0x300] sm:$0xff] }
 0x291   :  { %750 = vmatpush.msrb.mxu3 %v653_v4  ;;  %888 = vmatpush.msrb.mxu1 %v2333_v31 }
 0x292   :  { %689 = vmatmul.f32.gmra.mxu1 %v3428_v13  ;;  %717 = vmatpush.msrb.mxu0 %v635_v33  ;;  %2722 = vtanh.f32 %v602_v56 }
 0x293   :  { %751 = vmatpush.msrb.mxu3 %v652_v38  ;;  %889 = vmatpush.msrb.mxu1 %v2332_v35  ;;  %v2420_v38 = vld [vmem:[%s4951_s4 + $0x310] sm:$0xff] }
 0x294   :  { %909 = vmatpush.msra.mxu0 %v2363_v27  ;;  %v2449_v27 = vld [vmem:[%s4951_s4 + $0x3f8] sm:$0xff] }
 0x295   :  { %752 = vmatpush.msrb.mxu3 %v651_v23  ;;  %1263 = vmatpush.msra.mxu1 %v2433_v28  ;;  %v2465_v28 = vld [vmem:[%s4951_s4 + $0x478] sm:$0xff] }
 0x296   :  { %753 = vmatmul.f32.vlgmr.msrb.gmra.mxu3 %v3648_v21  ;;  %910 = vmatpush.msra.mxu0 %v2362_v30  ;;  %v2448_v30 = vld [vmem:[%s4951_s4 + $0x3f0] sm:$0xff] }
 0x297   :  { %v604_v37 = vpop.f32.mrf.mxu2  ;;  %1264 = vmatpush.msra.mxu1 %v2432_v54  ;;  %v2464_v54 = vld [vmem:[%s4951_s4 + $0x470] sm:$0xff] }
 0x298   :  { %v605_v60 = vadd.f32 %v604_v37, %v3586_v3  ;;  %v3677_v26 = vpop.eup %2722  ;;  %911 = vmatpush.msra.mxu0 %v2361_v55  ;;  %v2447_v55 = vld [vmem:[%s4951_s4 + $0x3e8] sm:$0xff] }
 0x299   :  { %1265 = vmatpush.msra.mxu1 %v2431_v50  ;;  %v2463_v50 = vld [vmem:[%s4951_s4 + $0x468] sm:$0xff] }
 0x29a   :  { %692 = vmatmul.f32.gmra.mxu1 %v3435_v18  ;;  %2724 = vtanh.f32 %v605_v60  ;;  %912 = vmatpush.msra.mxu0 %v2360_v36  ;;  %v2445_v36 = vld [vmem:[%s4951_s4 + $0x3d8] sm:$0xff] }
 0x29b   :  { %1266 = vmatpush.msra.mxu1 %v2430_v57  ;;  %v2461_v57 = vld [vmem:[%s4951_s4 + $0x458] sm:$0xff] }
 0x29c   :  { %913 = vmatpush.msra.mxu0 %v2359_v40  ;;  %v2443_v40 = vld [vmem:[%s4951_s4 + $0x3c8] sm:$0xff] }
 0x29d   :  { %1267 = vmatpush.msra.mxu1 %v2429_v62  ;;  %v2459_v62 = vld [vmem:[%s4951_s4 + $0x448] sm:$0xff] }
 0x29e   :  { %756 = vmatmul.f32.gmra.mxu3 %v3673_v25  ;;  %914 = vmatpush.msra.mxu0 %v2358_v1  ;;  %v2442_v1 = vld [vmem:[%s4951_s4 + $0x3c0] sm:$0xff] }
 0x29f   :  { %v607_v6 = vpop.f32.mrf.mxu2  ;;  %1268 = vmatpush.msra.mxu1 %v2428_v44  ;;  %v2458_v44 = vld [vmem:[%s4951_s4 + $0x440] sm:$0xff] }
 0x2a0   :  { %v608_v15 = vadd.f32 %v607_v6, %v3586_v3  ;;  %v3687_v39 = vpop.eup %2724 }
 0x2a1   :  { %1269 = vmatpush.msra.mxu1 %v2427_v5  ;;  %v2457_v5 = vld [vmem:[%s4951_s4 + $0x438] sm:$0xff] }
 0x2a2   :  { %695 = vmatmul.f32.gmra.mxu1 %v3443_v10  ;;  %2726 = vtanh.f32 %v608_v15 }
 0x2a3   :  { %1270 = vmatpush.msra.mxu1 %v2426_v43  ;;  %v2439_v43 = vld [vmem:[%s4951_s4 + $0x3a8] sm:$0xff] }
 0x2a5   :  { %1271 = vmatpush.msra.mxu1 %v2425_v16  ;;  %v2454_v16 = vld [vmem:[%s4951_s4 + $0x420] sm:$0xff] }
 0x2a6   :  { %759 = vmatmul.f32.gmra.mxu3 %v3677_v26 }
 0x2a7   :  { %v610_v49 = vpop.f32.mrf.mxu2  ;;  %1272 = vmatpush.msra.mxu1 %v2424_v47  ;;  %v2453_v47 = vld [vmem:[%s4951_s4 + $0x418] sm:$0xff] }
 0x2a8   :  { %v611_v58 = vadd.f32 %v610_v49, %v3586_v3  ;;  %v3718_v42 = vpop.eup %2726  ;;  %v2357_v3 = vld [vmem:[%s4951_s4 + $0x2c8] sm:$0xff]  ;;  %v2462_v49 = vld [vmem:[%s4951_s4 + $0x460] sm:$0xff] }
 0x2a9   :  { %915 = vmatpush.msra.mxu0 %v2357_v3  ;;  %1273 = vmatpush.msra.mxu1 %v2423_v20  ;;  %v2441_v3 = vld [vmem:[%s4951_s4 + $0x3b8] sm:$0xff]  ;;  %v2452_v20 = vld [vmem:[%s4951_s4 + $0x410] sm:$0xff] }
 0x2aa   :  { %698 = vmatmul.f32.gmra.mxu1 %v3455_v2 }
 0x2ab   :  { %916 = vmatpush.msra.mxu0 %v2356_v9  ;;  %1274 = vmatpush.msra.mxu1 %v2422_v46  ;;  %v2456_v9 = vld [vmem:[%s4951_s4 + $0x430] sm:$0xff]  ;;  %v2434_v46 = vld [vmem:[%s4951_s4 + $0x380] sm:$0xff] }
 0x2ad   :  { %917 = vmatpush.msra.mxu0 %v2355_v14  ;;  %1275 = vmatpush.msra.mxu1 %v2421_v61  ;;  %v2438_v14 = vld [vmem:[%s4951_s4 + $0x3a0] sm:$0xff] }
 0x2ae   :  { %762 = vmatmul.f32.gmra.mxu3 %v3687_v39 }
 0x2af   :  { %918 = vmatpush.msra.mxu0 %v2354_v17  ;;  %1276 = vmatpush.msra.mxu1 %v2420_v38  ;;  %v2437_v17 = vld [vmem:[%s4951_s4 + $0x398] sm:$0xff]  ;;  %v2516_v38 = vld [vmem:[%s4951_s4 + $0x4f0] sm:$0xff] }
 0x2b1   :  { %919 = vmatpush.msra.mxu0 %v2353_v19  ;;  %1277 = vmatpush.msra.mxu1 %v2419_v22  ;;  %v2436_v19 = vld [vmem:[%s4951_s4 + $0x390] sm:$0xff]  ;;  %v2514_v22 = vld [vmem:[%s4951_s4 + $0x4e0] sm:$0xff] }
 0x2b3   :  { %920 = vmatpush.msra.mxu0 %v2352_v32  ;;  %1278 = vmatpush.msra.mxu1 %v2418_v63  ;;  %v2451_v32 = vld [vmem:[%s4951_s4 + $0x408] sm:$0xff]  ;;  %v2512_v63 = vld [vmem:[%s4951_s4 + $0x4d0] sm:$0xff] }
 0x2b5   :  { %921 = vmatpush.msra.mxu0 %v2351_v0 }
 0x2b6   :  { %765 = vmatmul.f32.gmra.mxu3 %v3718_v42 }
 0x2b7   :  { %922 = vmatpush.msra.mxu0 %v2350_v53  ;;  %v2517_v53 = vld [vmem:[%s4951_s4 + $0x4f8] sm:$0xff] }
 0x2b9   :  { %923 = vmatpush.msra.mxu0 %v2349_v52  ;;  %v2515_v52 = vld [vmem:[%s4951_s4 + $0x4e8] sm:$0xff] }
 0x2bb   :  { %924 = vmatpush.msra.mxu0 %v2348_v24  ;;  %v2513_v24 = vld [vmem:[%s4951_s4 + $0x4d8] sm:$0xff] }
 0x2cf   :  { %v427_v51 = vpop.f32.mrf.mxu1 }
 0x2d0   :  { %v428_v59 = vadd.f32 %v427_v51, %v3701_v45 }
 0x2d2   :  { %2728 = vtanh.f32 %v428_v59  ;;  %v2460_v59 = vld [vmem:[%s4951_s4 + $0x450] sm:$0xff] }
 0x2d3   :  { %2730 = vtanh.f32 %v611_v58  ;;  %v2444_v58 = vld [vmem:[%s4951_s4 + $0x3d0] sm:$0xff] }
 0x2d7   :  { %v430_v8 = vpop.f32.mrf.mxu1 }
 0x2d8   :  { %v3739_v48 = vpop.eup %2728  ;;  %v431_v29 = vadd.f32 %v430_v8, %v3701_v45  ;;  %v2440_v8 = vld [vmem:[%s4951_s4 + $0x3b0] sm:$0xff] }
 0x2d9   :  { %718 = vmatmul.f32.vlgmr.msrb.gmra.mxu0 %v3739_v48  ;;  %890 = vmatmul.f32.vlgmr.msrb.gmra.mxu1 %v3739_v48  ;;  %v3750_v41 = vpop.eup %2730 }
 0x2da   :  { %2732 = vtanh.f32 %v431_v29  ;;  %768 = vmatmul.f32.gmra.mxu3 %v3750_v41  ;;  %1298 = vmatpush.msrb.mxu0 %v2449_v27  ;;  %v2455_v29 = vld [vmem:[%s4951_s4 + $0x428] sm:$0xff] }
 0x2db   :  { %1333 = vmatpush.msrb.mxu1 %v2465_v28  ;;  %v2507_v27 = vld [vmem:[%s4951_s4 + $0x4a8] sm:$0xff]  ;;  %v2506_v28 = vld [vmem:[%s4951_s4 + $0x4a0] sm:$0xff] }
 0x2dc   :  { %1299 = vmatpush.msrb.mxu0 %v2448_v30  ;;  %v2505_v30 = vld [vmem:[%s4951_s4 + $0x498] sm:$0xff] }
 0x2dd   :  { %1334 = vmatpush.msrb.mxu1 %v2464_v54  ;;  %v2504_v54 = vld [vmem:[%s4951_s4 + $0x490] sm:$0xff] }
 0x2de   :  { %1300 = vmatpush.msrb.mxu0 %v2447_v55 }
 0x2df   :  { %v433_v12 = vpop.f32.mrf.mxu1  ;;  %1335 = vmatpush.msrb.mxu1 %v2463_v50  ;;  %v2503_v50 = vld [vmem:[%s4951_s4 + $0x488] sm:$0xff] }
 0x2e0   :  { %v3771_v4 = vpop.eup %2732  ;;  %v434_v34 = vadd.f32 %v433_v12, %v3701_v45  ;;  %v2435_v12 = vld [vmem:[%s4951_s4 + $0x388] sm:$0xff] }
 0x2e1   :  { %721 = vmatmul.f32.gmra.mxu0 %v3771_v4  ;;  %893 = vmatmul.f32.gmra.mxu1 %v3771_v4 }
 0x2e2   :  { %2734 = vtanh.f32 %v434_v34  ;;  %1336 = vmatpush.msrb.mxu1 %v2462_v49  ;;  %v2450_v34 = vld [vmem:[%s4951_s4 + $0x400] sm:$0xff] }
 0x2e4   :  { %1337 = vmatpush.msrb.mxu1 %v2461_v57 }
 0x2e6   :  { %1338 = vmatpush.msrb.mxu1 %v2460_v59 }
 0x2e7   :  { %v436_v23 = vpop.f32.mrf.mxu1 }
 0x2e8   :  { %v3800_v31 = vpop.eup %2734  ;;  %v437_v33 = vadd.f32 %v436_v23, %v3701_v45  ;;  %1339 = vmatpush.msrb.mxu1 %v2459_v62 }
 0x2e9   :  { %724 = vmatmul.f32.gmra.mxu0 %v3800_v31  ;;  %896 = vmatmul.f32.gmra.mxu1 %v3800_v31 }
 0x2ea   :  { %2736 = vtanh.f32 %v437_v33  ;;  %1340 = vmatpush.msrb.mxu1 %v2458_v44  ;;  %v2511_v33 = vld [vmem:[%s4951_s4 + $0x4c8] sm:$0xff] }
 0x2ec   :  { %1341 = vmatpush.msrb.mxu1 %v2457_v5 }
 0x2ee   :  { %1342 = vmatpush.msrb.mxu1 %v2456_v9 }
 0x2ef   :  { %v439_v35 = vpop.f32.mrf.mxu1 }
 0x2f0   :  { %v3805_v56 = vpop.eup %2736  ;;  %v440_v37 = vadd.f32 %v439_v35, %v3701_v45  ;;  %1343 = vmatpush.msrb.mxu1 %v2455_v29  ;;  %v2510_v35 = vld [vmem:[%s4951_s4 + $0x4c0] sm:$0xff] }
 0x2f1   :  { %727 = vmatmul.f32.gmra.mxu0 %v3805_v56  ;;  %899 = vmatmul.f32.gmra.mxu1 %v3805_v56 }
 0x2f2   :  { %2738 = vtanh.f32 %v440_v37  ;;  %1344 = vmatpush.msrb.mxu1 %v2454_v16  ;;  %v2509_v37 = vld [vmem:[%s4951_s4 + $0x4b8] sm:$0xff]  ;;  %v4001_v16 = vpop.f32.mrf.mxu2 }
 0x2f4   :  { %1345 = vmatpush.msrb.mxu1 %v2453_v47 }
 0x2f6   :  { %1346 = vmatpush.msrb.mxu1 %v2452_v20 }
 0x2f7   :  { %v442_v60 = vpop.f32.mrf.mxu1 }
 0x2f8   :  { %v3810_v6 = vpop.eup %2738  ;;  %v443_v15 = vadd.f32 %v442_v60, %v3701_v45  ;;  %v2446_v45 = vld [vmem:[%s4951_s4 + $0x3e0] sm:$0xff]  ;;  %1347 = vmatpush.msrb.mxu1 %v2451_v32  ;;  %v2508_v60 = vld [vmem:[%s4951_s4 + $0x4b0] sm:$0xff] }
 0x2f9   :  { %730 = vmatmul.f32.gmra.mxu0 %v3810_v6  ;;  %902 = vmatmul.f32.gmra.mxu1 %v3810_v6 }
 0x2fa   :  { %2740 = vtanh.f32 %v443_v15  ;;  %1301 = vmatpush.msrb.mxu0 %v2446_v45  ;;  %1348 = vmatpush.msrb.mxu1 %v2450_v34  ;;  %v2502_v45 = vld [vmem:[%s4951_s4 + $0x480] sm:$0xff]  ;;  %v859_v34 = vpop.f32.mrf.mxu2 }
 0x2fc   :  { %1302 = vmatpush.msrb.mxu0 %v2445_v36 }
 0x2fe   :  { %1303 = vmatpush.msrb.mxu0 %v2444_v58 }
 0x2ff   :  { %v3921_v0 = vpop.f32.mrf.mxu1 }
 0x300   :  { %v3839_v51 = vpop.eup %2740  ;;  %1304 = vmatpush.msrb.mxu0 %v2443_v40 }
 0x301   :  { %733 = vmatmul.f32.gmra.mxu0 %v3839_v51  ;;  %905 = vmatmul.f32.gmra.mxu1 %v3839_v51 }
 0x302   :  { %1305 = vmatpush.msrb.mxu0 %v2442_v1 }
 0x304   :  { %1306 = vmatpush.msrb.mxu0 %v2441_v3 }
 0x306   :  { %1307 = vmatpush.msrb.mxu0 %v2440_v8 }
 0x307   :  { %v3925_v61 = vpop.f32.mrf.mxu1 }
 0x308   :  { %1308 = vmatpush.msrb.mxu0 %v2439_v43 }
 0x309   :  { %925 = vmatmul.f32.vlgmr.msra.gmra.mxu0 %v3648_v21  ;;  %1279 = vmatmul.f32.vlgmr.msra.gmra.mxu1 %v3420_v7 }
 0x30a   :  { %1309 = vmatpush.msrb.mxu0 %v2438_v14  ;;  %1579 = vmatpush.msra.mxu1 %v2517_v53 }
 0x30c   :  { %1310 = vmatpush.msrb.mxu0 %v2437_v17  ;;  %1580 = vmatpush.msra.mxu1 %v2516_v38 }
 0x30e   :  { %1311 = vmatpush.msrb.mxu0 %v2436_v19  ;;  %1581 = vmatpush.msra.mxu1 %v2515_v52 }
 0x30f   :  { %v3941_v23 = vpop.f32.mrf.mxu1 }
 0x310   :  { %1312 = vmatpush.msrb.mxu0 %v2435_v12  ;;  %1582 = vmatpush.msra.mxu1 %v2514_v22 }
 0x311   :  { %928 = vmatmul.f32.gmra.mxu0 %v3673_v25  ;;  %1282 = vmatmul.f32.gmra.mxu1 %v3424_v11 }
 0x312   :  { %1313 = vmatpush.msrb.mxu0 %v2434_v46  ;;  %1583 = vmatpush.msra.mxu1 %v2513_v24 }
 0x314   :  { %1584 = vmatpush.msra.mxu1 %v2512_v63 }
 0x316   :  { %1585 = vmatpush.msra.mxu1 %v2511_v33 }
 0x317   :  { %v693_v15 = vpop.f32.mrf.mxu1 }
 0x318   :  { %1586 = vmatpush.msra.mxu1 %v2510_v35 }
 0x319   :  { %931 = vmatmul.f32.gmra.mxu0 %v3677_v26  ;;  %1285 = vmatmul.f32.gmra.mxu1 %v3428_v13  ;;  %v754_v49 = vpop.f32.mrf.mxu3 }
 0x31a   :  { %1587 = vmatpush.msra.mxu1 %v2509_v37 }
 0x31c   :  { %1588 = vmatpush.msra.mxu1 %v2508_v60 }
 0x31e   :  { %1589 = vmatpush.msra.mxu1 %v2507_v27 }
 0x31f   :  { %v696_v55 = vpop.f32.mrf.mxu1 }
 0x320   :  { %1590 = vmatpush.msra.mxu1 %v2506_v28 }
 0x321   :  { %934 = vmatmul.f32.gmra.mxu0 %v3687_v39  ;;  %1288 = vmatmul.f32.gmra.mxu1 %v3435_v18  ;;  %v757_v57 = vpop.f32.mrf.mxu3 }
 0x322   :  { %1591 = vmatpush.msra.mxu1 %v2505_v30 }
 0x324   :  { %1592 = vmatpush.msra.mxu1 %v2504_v54 }
 0x326   :  { %1593 = vmatpush.msra.mxu1 %v2503_v50 }
 0x327   :  { %v699_v36 = vpop.f32.mrf.mxu1 }
 0x328   :  { %1594 = vmatpush.msra.mxu1 %v2502_v45 }
 0x329   :  { %937 = vmatmul.f32.gmra.mxu0 %v3718_v42  ;;  %1291 = vmatmul.f32.gmra.mxu1 %v3443_v10  ;;  %v760_v1 = vpop.f32.mrf.mxu3 }
 0x331   :  { %940 = vmatmul.f32.gmra.mxu0 %v3750_v41  ;;  %1294 = vmatmul.f32.gmra.mxu1 %v3455_v2  ;;  %v763_v5 = vpop.f32.mrf.mxu3 }
 0x339   :  { %1314 = vmatmul.f32.vlgmr.msrb.gmra.mxu0 %v3739_v48  ;;  %1349 = vmatmul.f32.vlgmr.msrb.gmra.mxu1 %v3648_v21  ;;  %v766_v43 = vpop.f32.mrf.mxu3 }
 0x341   :  { %1317 = vmatmul.f32.gmra.mxu0 %v3771_v4  ;;  %1352 = vmatmul.f32.gmra.mxu1 %v3673_v25 }
 0x349   :  { %1320 = vmatmul.f32.gmra.mxu0 %v3800_v31  ;;  %1355 = vmatmul.f32.gmra.mxu1 %v3677_v26 }
 0x351   :  { %1323 = vmatmul.f32.gmra.mxu0 %v3805_v56  ;;  %1358 = vmatmul.f32.gmra.mxu1 %v3687_v39 }
 0x356   :  { %v719_v58 = vpop.f32.mrf.mxu0  ;;  %v3989_v59 = vpop.f32.mrf.mxu1 }
 0x357   :  { %v720_v33 = vadd.f32 %v719_v58, %v3921_v0  ;;  %v773_v0 = vld [vmem:[%s4952_s5 + $0x8] sm:$0xff] }
 0x359   :  { %1326 = vmatmul.f32.gmra.mxu0 %v3810_v6  ;;  %1361 = vmatmul.f32.gmra.mxu1 %v3718_v42  ;;  %v755_v60 = vadd.f32 %v754_v49, %v720_v33 }
 0x35d   :  { %v769_v17 = vpop.f32.mrf.mxu3 }
 0x35e   :  { %v722_v40 = vpop.f32.mrf.mxu0  ;;  %v3993_v62 = vpop.f32.mrf.mxu1 }
 0x35f   :  { %v723_v52 = vadd.f32 %v722_v40, %v3925_v61  ;;  %v862_v61 = vpop.f32.mrf.mxu2  ;;  %v776_v40 = vld [vmem:[%s4952_s5 + $0x20] sm:$0xff] }
 0x361   :  { %1329 = vmatmul.f32.gmra.mxu0 %v3839_v51  ;;  %1364 = vmatmul.f32.gmra.mxu1 %v3750_v41  ;;  %v758_v37 = vadd.f32 %v757_v57, %v723_v52  ;;  %v2364_v52 = vld [vmem:[%s4952_s5 + $0x90] sm:$0xff] }
 0x366   :  { %v725_v44 = vpop.f32.mrf.mxu0  ;;  %v3997_v3 = vpop.f32.mrf.mxu1 }
 0x367   :  { %v726_v53 = vadd.f32 %v725_v44, %v3941_v23  ;;  %v772_v23 = vld [vmem:[%s4952_s5] sm:$0xff]  ;;  %v865_v54 = vpop.f32.mrf.mxu2 }
 0x369   :  { %1595 = vmatmul.f32.vlgmr.msra.gmra.mxu1 %v3420_v7  ;;  %v761_v35 = vadd.f32 %v760_v1, %v726_v53 }
 0x36e   :  { %v728_v8 = vpop.f32.mrf.mxu0  ;;  %v900_v9 = vpop.f32.mrf.mxu1 }
 0x36f   :  { %v729_v32 = vadd.f32 %v728_v8, %v693_v15  ;;  %v868_v49 = vpop.f32.mrf.mxu2 }
 0x371   :  { %1598 = vmatmul.f32.gmra.mxu1 %v3424_v11  ;;  %v764_v22 = vadd.f32 %v763_v5, %v729_v32  ;;  %v777_v32 = vld [vmem:[%s4952_s5 + $0x28] sm:$0xff] }
 0x376   :  { %v731_v29 = vpop.f32.mrf.mxu0  ;;  %v903_v14 = vpop.f32.mrf.mxu1 }
 0x377   :  { %v732_v20 = vadd.f32 %v731_v29, %v696_v55  ;;  %v774_v55 = vld [vmem:[%s4952_s5 + $0x10] sm:$0xff]  ;;  %v871_v1 = vpop.f32.mrf.mxu2 }
 0x379   :  { %1601 = vmatmul.f32.gmra.mxu1 %v3428_v13  ;;  %v767_v38 = vadd.f32 %v766_v43, %v732_v20  ;;  %v904_v43 = vadd.f32 %v903_v14, %v868_v49  ;;  %v898_v20 = vadd.f32 %v3997_v3, %v862_v61  ;;  %v2367_v61 = vld [vmem:[%s4952_s5 + $0xa8] sm:$0xff]  ;;  %v782_v49 = vld [vmem:[%s4952_s5 + $0x50] sm:$0xff] }
 0x37e   :  { %v734_v47 = vpop.f32.mrf.mxu0  ;;  %v906_v19 = vpop.f32.mrf.mxu1 }
 0x37f   :  { %v735_v12 = vadd.f32 %v734_v47, %v699_v36  ;;  %v775_v36 = vld [vmem:[%s4952_s5 + $0x18] sm:$0xff]  ;;  %v907_v44 = vadd.f32 %v906_v19, %v871_v1  ;;  %v2547_v1 = vld [vmem:[%s4951_s4 + $0x5e8] sm:$0xff] }
 0x381   :  { %v770_v46 = vadd.f32 %v769_v17, %v735_v12  ;;  %1604 = vmatmul.f32.gmra.mxu1 %v3435_v18  ;;  %v901_v17 = vadd.f32 %v900_v9, %v865_v54  ;;  %v892_v9 = vadd.f32 %v3989_v59, %v4001_v16  ;;  %v2365_v59 = vld [vmem:[%s4952_s5 + $0x98] sm:$0xff] }
 0x382   :  { %v779_v16 = vld [vmem:[%s4952_s5 + $0x38] sm:$0xff] }
 0x383   :  { %1153 = vmatpush.msrb.mxu2 %v770_v46  ;;  %v895_v46 = vadd.f32 %v3993_v62, %v859_v34  ;;  %v778_v62 = vld [vmem:[%s4952_s5 + $0x30] sm:$0xff]  ;;  %v2533_v54 = vld [vmem:[%s4951_s4 + $0x578] sm:$0xff] }
 0x385   :  { %1154 = vmatpush.msrb.mxu2 %v767_v38 }
 0x386   :  { %v926_v24 = vpop.f32.mrf.mxu0  ;;  %v4007_v63 = vpop.f32.mrf.mxu1 }
 0x387   :  { %1155 = vmatpush.msrb.mxu2 %v764_v22  ;;  %v927_v38 = vadd.f32 %v926_v24, %v892_v9 }
 0x389   :  { %1156 = vmatpush.msrb.mxu2 %v761_v35  ;;  %1607 = vmatmul.f32.gmra.mxu1 %v3443_v10  ;;  %v2366_v35 = vld [vmem:[%s4952_s5 + $0xa0] sm:$0xff] }
 0x38b   :  { %1157 = vmatpush.msrb.mxu2 %v758_v37  ;;  %v780_v37 = vld [vmem:[%s4952_s5 + $0x40] sm:$0xff] }
 0x38d   :  { %1158 = vmatpush.msrb.mxu2 %v755_v60 }
 0x38e   :  { %v929_v15 = vpop.f32.mrf.mxu0  ;;  %2400 = vmatmul.msk.f32.vlgmr.msrb.gmra.mxu2 %vm963_vm2, %v772_v23  ;;  %v4015_v27 = vpop.f32.mrf.mxu1 }
 0x38f   :  { %v930_v3 = vadd.f32 %v929_v15, %v895_v46  ;;  %v781_v15 = vld [vmem:[%s4952_s5 + $0x48] sm:$0xff]  ;;  %v2544_v46 = vld [vmem:[%s4951_s4 + $0x5d0] sm:$0xff] }
 0x391   :  { %1610 = vmatmul.f32.gmra.mxu1 %v3455_v2 }
 0x396   :  { %v932_v28 = vpop.f32.mrf.mxu0  ;;  %2401 = vmatmul.msk.f32.gmra.mxu2 %vm963_vm2, %v773_v0  ;;  %v4022_v30 = vpop.f32.mrf.mxu1 }
 0x397   :  { %v933_v19 = vadd.f32 %v932_v28, %v898_v20 }
 0x39e   :  { %v935_v50 = vpop.f32.mrf.mxu0  ;;  %2402 = vmatmul.msk.f32.gmra.mxu2 %vm963_vm2, %v774_v55  ;;  %v4028_v45 = vpop.f32.mrf.mxu1  ;;  %v2549_v55 = vld [vmem:[%s4951_s4 + $0x5f8] sm:$0xff] }
 0x39f   :  { %v936_v12 = vadd.f32 %v935_v50, %v901_v17  ;;  %1649 = vmatpush.msra.mxu2 %v2549_v55  ;;  %v2368_v50 = vld [vmem:[%s4952_s5 + $0xb0] sm:$0xff]  ;;  %v2534_v55 = vld [vmem:[%s4951_s4 + $0x580] sm:$0xff] }
 0x3a6   :  { %v938_v57 = vpop.f32.mrf.mxu0  ;;  %2403 = vmatmul.msk.f32.gmra.mxu2 %vm963_vm2, %v775_v36  ;;  %v4034_v58 = vpop.f32.mrf.mxu1 }
 0x3a7   :  { %v939_v47 = vadd.f32 %v938_v57, %v904_v43  ;;  %v2548_v57 = vld [vmem:[%s4951_s4 + $0x5f0] sm:$0xff] }
 0x3a8   :  { %1650 = vmatpush.msra.mxu2 %v2548_v57  ;;  %v2528_v57 = vld [vmem:[%s4951_s4 + $0x550] sm:$0xff] }
 0x3aa   :  { %1651 = vmatpush.msra.mxu2 %v2547_v1  ;;  %v788_v1 = vld [vmem:[%s4952_s5 + $0x80] sm:$0xff] }
 0x3ae   :  { %v941_v5 = vpop.f32.mrf.mxu0  ;;  %2404 = vmatmul.msk.f32.gmra.mxu2 %vm963_vm2, %v776_v40  ;;  %v1295_v8 = vpop.f32.mrf.mxu1  ;;  %v2532_v40 = vld [vmem:[%s4951_s4 + $0x570] sm:$0xff] }
 0x3af   :  { %v942_v29 = vadd.f32 %v941_v5, %v907_v44 }
 0x3b1   :  { %1028 = vmatpush.msra.mxu3 %v942_v29 }
 0x3b3   :  { %1029 = vmatpush.msra.mxu3 %v939_v47  ;;  %v2369_v47 = vld [vmem:[%s4952_s5 + $0xb8] sm:$0xff] }
 0x3b5   :  { %1030 = vmatpush.msra.mxu3 %v936_v12 }
 0x3b6   :  { %2405 = vmatmul.msk.f32.gmra.mxu2 %vm963_vm2, %v777_v32  ;;  %v4046_v53 = vpop.f32.mrf.mxu0  ;;  %v4048_v14 = vpop.f32.mrf.mxu1 }
 0x3b7   :  { %1031 = vmatpush.msra.mxu3 %v933_v19  ;;  %v2531_v19 = vld [vmem:[%s4951_s4 + $0x568] sm:$0xff] }
 0x3b9   :  { %1032 = vmatpush.msra.mxu3 %v930_v3  ;;  %v2543_v3 = vld [vmem:[%s4951_s4 + $0x5c8] sm:$0xff] }
 0x3bb   :  { %1033 = vmatpush.msra.mxu3 %v927_v38 }
 0x3bc   :  { %2382 = vmatmul.msk.f32.vlgmr.msra.gmra.mxu3 %vm963_vm2, %v2364_v52  ;;  %v2370_v52 = vld [vmem:[%s4952_s5 + $0xc0] sm:$0xff] }
 0x3bd   :  { %1614 = vmatpush.msrb.mxu3 %v2533_v54  ;;  %v2529_v54 = vld [vmem:[%s4951_s4 + $0x558] sm:$0xff] }
 0x3be   :  { %2406 = vmatmul.msk.f32.gmra.mxu2 %vm963_vm2, %v778_v62  ;;  %v1318_v34 = vpop.f32.mrf.mxu0  ;;  %v1353_v22 = vpop.f32.mrf.mxu1 }
 0x3bf   :  { %1615 = vmatpush.msrb.mxu3 %v2532_v40  ;;  %v2374_v40 = vld [vmem:[%s4952_s5 + $0xe0] sm:$0xff] }
 0x3c1   :  { %1616 = vmatpush.msrb.mxu3 %v2531_v19  ;;  %v2611_v19 = vld [vmem:[%s4951_s4 + $0x6c8] sm:$0xff] }
 0x3c4   :  { %2383 = vmatmul.msk.f32.gmra.mxu3 %vm963_vm2, %v2365_v59  ;;  %v2371_v59 = vld [vmem:[%s4952_s5 + $0xc8] sm:$0xff] }
 0x3c6   :  { %2407 = vmatmul.msk.f32.gmra.mxu2 %vm963_vm2, %v779_v16  ;;  %v1321_v24 = vpop.f32.mrf.mxu0  ;;  %v1356_v33 = vpop.f32.mrf.mxu1  ;;  %v2539_v16 = vld [vmem:[%s4951_s4 + $0x5a8] sm:$0xff] }
 0x3c7   :  { %v1322_v20 = vadd.f32 %v1321_v24, %v4022_v30  ;;  %v2545_v30 = vld [vmem:[%s4951_s4 + $0x5d8] sm:$0xff]  ;;  %v785_v24 = vld [vmem:[%s4952_s5 + $0x68] sm:$0xff] }
 0x3c9   :  { %v1357_v9 = vadd.f32 %v1356_v33, %v1322_v20  ;;  %v2467_v33 = vld [vmem:[%s4952_s5 + $0x128] sm:$0xff] }
 0x3cc   :  { %2384 = vmatmul.msk.f32.gmra.mxu3 %vm963_vm2, %v2366_v35  ;;  %v2530_v35 = vld [vmem:[%s4951_s4 + $0x560] sm:$0xff] }
 0x3cd   :  { %1617 = vmatpush.msrb.mxu3 %v2530_v35  ;;  %v2605_v35 = vld [vmem:[%s4951_s4 + $0x698] sm:$0xff] }
 0x3ce   :  { %2408 = vmatmul.msk.f32.gmra.mxu2 %vm963_vm2, %v780_v37  ;;  %v1324_v60 = vpop.f32.mrf.mxu0  ;;  %v1359_v23 = vpop.f32.mrf.mxu1  ;;  %v2538_v37 = vld [vmem:[%s4951_s4 + $0x5a0] sm:$0xff] }
 0x3cf   :  { %v1325_v29 = vadd.f32 %v1324_v60, %v4028_v45  ;;  %v2546_v45 = vld [vmem:[%s4951_s4 + $0x5e0] sm:$0xff]  ;;  %v2537_v60 = vld [vmem:[%s4951_s4 + $0x598] sm:$0xff]  ;;  %1618 = vmatpush.msrb.mxu3 %v2529_v54 }
 0x3d0   :  { %1652 = vmatpush.msra.mxu2 %v2546_v45  ;;  %v2614_v45 = vld [vmem:[%s4951_s4 + $0x6e0] sm:$0xff] }
 0x3d1   :  { %v1360_v32 = vadd.f32 %v1359_v23, %v1325_v29  ;;  %v2536_v23 = vld [vmem:[%s4951_s4 + $0x590] sm:$0xff]  ;;  %1619 = vmatpush.msrb.mxu3 %v2528_v57  ;;  %v2602_v54 = vld [vmem:[%s4951_s4 + $0x680] sm:$0xff] }
 0x3d2   :  { %1653 = vmatpush.msra.mxu2 %v2545_v30  ;;  %v2616_v29 = vld [vmem:[%s4951_s4 + $0x6f0] sm:$0xff] }
 0x3d3   :  { %v2612_v30 = vld [vmem:[%s4951_s4 + $0x6d0] sm:$0xff] }
 0x3d4   :  { %2385 = vmatmul.msk.f32.gmra.mxu3 %vm963_vm2, %v2367_v61  ;;  %1654 = vmatpush.msra.mxu2 %v2544_v46  ;;  %v2372_v61 = vld [vmem:[%s4952_s5 + $0xd0] sm:$0xff] }
 0x3d5   :  { %v2376_v46 = vld [vmem:[%s4952_s5 + $0xf0] sm:$0xff] }
 0x3d6   :  { %2409 = vmatmul.msk.f32.gmra.mxu2 %vm963_vm2, %v781_v15  ;;  %v1327_v0 = vpop.f32.mrf.mxu0  ;;  %v1362_v28 = vpop.f32.mrf.mxu1  ;;  %v2535_v15 = vld [vmem:[%s4951_s4 + $0x588] sm:$0xff] }
 0x3d7   :  { %v1328_v44 = vadd.f32 %v1327_v0, %v4034_v58  ;;  %v783_v58 = vld [vmem:[%s4952_s5 + $0x58] sm:$0xff]  ;;  %1655 = vmatpush.msra.mxu2 %v2543_v3  ;;  %v786_v0 = vld [vmem:[%s4952_s5 + $0x70] sm:$0xff]  ;;  %v2610_v3 = vld [vmem:[%s4951_s4 + $0x6c0] sm:$0xff] }
 0x3d9   :  { %v1363_v12 = vadd.f32 %v1362_v28, %v1328_v44  ;;  %v2468_v28 = vld [vmem:[%s4952_s5 + $0x130] sm:$0xff]  ;;  %v2470_v44 = vld [vmem:[%s4952_s5 + $0x140] sm:$0xff] }
 0x3dc   :  { %2386 = vmatmul.msk.f32.gmra.mxu3 %vm963_vm2, %v2368_v50  ;;  %v2373_v50 = vld [vmem:[%s4952_s5 + $0xd8] sm:$0xff] }
 0x3de   :  { %2410 = vmatmul.msk.f32.gmra.mxu2 %vm963_vm2, %v782_v49  ;;  %v1330_v36 = vpop.f32.mrf.mxu0  ;;  %v1365_v43 = vpop.f32.mrf.mxu1  ;;  %v787_v49 = vld [vmem:[%s4952_s5 + $0x78] sm:$0xff] }
 0x3df   :  { %v1331_v5 = vadd.f32 %v1330_v36, %v1295_v8  ;;  %v1319_v8 = vadd.f32 %v1318_v34, %v4015_v27  ;;  %v1316_v27 = vadd.f32 %v4046_v53, %v4007_v63  ;;  %v784_v63 = vld [vmem:[%s4952_s5 + $0x60] sm:$0xff]  ;;  %v2469_v36 = vld [vmem:[%s4952_s5 + $0x138] sm:$0xff] }
 0x3e0   :  { %v2466_v53 = vld [vmem:[%s4952_s5 + $0x120] sm:$0xff] }
 0x3e1   :  { %v1366_v17 = vadd.f32 %v1365_v43, %v1331_v5  ;;  %v1354_v38 = vadd.f32 %v1353_v22, %v1319_v8  ;;  %v1351_v62 = vadd.f32 %v4048_v14, %v1316_v27  ;;  %v2542_v34 = vld [vmem:[%s4951_s4 + $0x5c0] sm:$0xff]  ;;  %v2541_v14 = vld [vmem:[%s4951_s4 + $0x5b8] sm:$0xff]  ;;  %v2540_v22 = vld [vmem:[%s4951_s4 + $0x5b0] sm:$0xff] }
 0x3e2   :  { %1656 = vmatpush.msra.mxu2 %v2542_v34  ;;  %v2527_v5 = vld [vmem:[%s4951_s4 + $0x548] sm:$0xff]  ;;  %v2617_v43 = vld [vmem:[%s4951_s4 + $0x6f8] sm:$0xff]  ;;  %v2472_v27 = vld [vmem:[%s4952_s5 + $0x150] sm:$0xff] }
 0x3e3   :  { %1451 = vmatpush.msra.mxu0 %v1366_v17  ;;  %1620 = vmatpush.msrb.mxu3 %v2527_v5  ;;  %v2375_v17 = vld [vmem:[%s4952_s5 + $0xe8] sm:$0xff]  ;;  %v2613_v8 = vld [vmem:[%s4951_s4 + $0x6d8] sm:$0xff] }
 0x3e4   :  { %2387 = vmatmul.msk.f32.gmra.mxu3 %vm963_vm2, %v2369_v47  ;;  %1657 = vmatpush.msra.mxu2 %v2541_v14  ;;  %v2615_v47 = vld [vmem:[%s4951_s4 + $0x6e8] sm:$0xff]  ;;  %v2377_v34 = vld [vmem:[%s4952_s5 + $0xf8] sm:$0xff]  ;;  %v2522_v14 = vld [vmem:[%s4951_s4 + $0x520] sm:$0xff] }
 0x3e5   :  { %1452 = vmatpush.msra.mxu0 %v1363_v12  ;;  %v789_v12 = vld [vmem:[%s4952_s5 + $0x88] sm:$0xff]  ;;  %v4387_v5 = vld [vmem:[%s4951_s4 + $0x778] sm:$0xff] }
 0x3e6   :  { %2411 = vmatmul.msk.f32.gmra.mxu2 %vm963_vm2, %v783_v58  ;;  %v2471_v58 = vld [vmem:[%s4952_s5 + $0x148] sm:$0xff] }
 0x3e7   :  { %1453 = vmatpush.msra.mxu0 %v1360_v32  ;;  %1658 = vmatpush.msra.mxu2 %v2540_v22  ;;  %v2526_v32 = vld [vmem:[%s4951_s4 + $0x540] sm:$0xff]  ;;  %v2607_v22 = vld [vmem:[%s4951_s4 + $0x6a8] sm:$0xff] }
 0x3e8   :  { %1621 = vmatpush.msrb.mxu3 %v2526_v32  ;;  %v4424_v32 = vld [vmem:[%s4951_s4 + $0x760] sm:$0xff] }
 0x3e9   :  { %1454 = vmatpush.msra.mxu0 %v1357_v9  ;;  %1659 = vmatpush.msra.mxu2 %v2539_v16  ;;  %v2525_v9 = vld [vmem:[%s4951_s4 + $0x538] sm:$0xff] }
 0x3ea   :  { %1622 = vmatpush.msrb.mxu3 %v2525_v9  ;;  %v2521_v16 = vld [vmem:[%s4951_s4 + $0x518] sm:$0xff] }
 0x3eb   :  { %1455 = vmatpush.msra.mxu0 %v1354_v38  ;;  %1660 = vmatpush.msra.mxu2 %v2538_v37 }
 0x3ec   :  { %2388 = vmatmul.msk.f32.gmra.mxu3 %vm963_vm2, %v2370_v52  ;;  %v2524_v52 = vld [vmem:[%s4951_s4 + $0x530] sm:$0xff] }
 0x3ed   :  { %1456 = vmatpush.msra.mxu0 %v1351_v62  ;;  %1661 = vmatpush.msra.mxu2 %v2537_v60  ;;  %v2609_v62 = vld [vmem:[%s4951_s4 + $0x6b8] sm:$0xff]  ;;  %v2519_v60 = vld [vmem:[%s4951_s4 + $0x508] sm:$0xff] }
 0x3ee   :  { %2412 = vmatmul.msk.f32.gmra.mxu2 %vm963_vm2, %v784_v63  ;;  %2484 = vmatmul.msk.f32.vlgmr.msra.gmra.mxu0 %vm963_vm2, %v2466_v53  ;;  %v2523_v63 = vld [vmem:[%s4951_s4 + $0x528] sm:$0xff]  ;;  %v2608_v53 = vld [vmem:[%s4951_s4 + $0x6b0] sm:$0xff] }
 0x3ef   :  { %1662 = vmatpush.msra.mxu2 %v2536_v23  ;;  %1623 = vmatpush.msrb.mxu3 %v2524_v52  ;;  %v2604_v23 = vld [vmem:[%s4951_s4 + $0x690] sm:$0xff] }
 0x3f0   :  { %1965 = vmatpush.msrb.mxu0 %v4387_v5  ;;  %v4449_v52 = vld [vmem:[%s4951_s4 + $0x750] sm:$0xff] }
 0x3f1   :  { %1663 = vmatpush.msra.mxu2 %v2535_v15  ;;  %1624 = vmatpush.msrb.mxu3 %v2523_v63  ;;  %v2518_v15 = vld [vmem:[%s4951_s4 + $0x500] sm:$0xff] }
 0x3f2   :  { %v2478_v63 = vld [vmem:[%s4952_s5 + $0x180] sm:$0xff] }
 0x3f3   :  { %1664 = vmatpush.msra.mxu2 %v2534_v55  ;;  %1625 = vmatpush.msrb.mxu3 %v2522_v14  ;;  %v2592_v14 = vld [vmem:[%s4951_s4 + $0x630] sm:$0xff] }
 0x3f4   :  { %2389 = vmatmul.msk.f32.gmra.mxu3 %vm963_vm2, %v2371_v59  ;;  %v2473_v59 = vld [vmem:[%s4952_s5 + $0x158] sm:$0xff] }
 0x3f5   :  { %1930 = vmatpush.msrb.mxu2 %v2617_v43  ;;  %1626 = vmatpush.msrb.mxu3 %v2521_v16 }
 0x3f6   :  { %2413 = vmatmul.msk.f32.gmra.mxu2 %vm963_vm2, %v785_v24  ;;  %2485 = vmatmul.msk.f32.gmra.mxu0 %vm963_vm2, %v2467_v33  ;;  %v2606_v24 = vld [vmem:[%s4951_s4 + $0x6a0] sm:$0xff]  ;;  %v2520_v33 = vld [vmem:[%s4951_s4 + $0x510] sm:$0xff] }
 0x3f7   :  { %1931 = vmatpush.msrb.mxu2 %v2616_v29  ;;  %1627 = vmatpush.msrb.mxu3 %v2520_v33  ;;  %v4496_v33 = vld [vmem:[%s4951_s4 + $0x730] sm:$0xff] }
 0x3f9   :  { %1932 = vmatpush.msrb.mxu2 %v2615_v47  ;;  %1628 = vmatpush.msrb.mxu3 %v2519_v60  ;;  %v4399_v47 = vld [vmem:[%s4951_s4 + $0x770] sm:$0xff]  ;;  %v2479_v60 = vld [vmem:[%s4952_s5 + $0x188] sm:$0xff] }
 0x3fa   :  { %1966 = vmatpush.msrb.mxu0 %v4399_v47 }
 0x3fb   :  { %1933 = vmatpush.msrb.mxu2 %v2614_v45  ;;  %1629 = vmatpush.msrb.mxu3 %v2518_v15  ;;  %v2477_v45 = vld [vmem:[%s4952_s5 + $0x178] sm:$0xff]  ;;  %v2588_v15 = vld [vmem:[%s4951_s4 + $0x610] sm:$0xff] }
 0x3fc   :  { %2390 = vmatmul.msk.f32.gmra.mxu3 %vm963_vm2, %v2372_v61  ;;  %v2378_v61 = vld [vmem:[%s4952_s5 + $0x100] sm:$0xff] }
 0x3fd   :  { %1934 = vmatpush.msrb.mxu2 %v2613_v8  ;;  %v2597_v8 = vld [vmem:[%s4951_s4 + $0x658] sm:$0xff] }
 0x3fe   :  { %2414 = vmatmul.msk.f32.gmra.mxu2 %vm963_vm2, %v786_v0  ;;  %2486 = vmatmul.msk.f32.gmra.mxu0 %vm963_vm2, %v2468_v28  ;;  %v2603_v0 = vld [vmem:[%s4951_s4 + $0x688] sm:$0xff]  ;;  %v2474_v28 = vld [vmem:[%s4952_s5 + $0x160] sm:$0xff] }
 0x3ff   :  { %1935 = vmatpush.msrb.mxu2 %v2612_v30 }
 0x401   :  { %1936 = vmatpush.msrb.mxu2 %v2611_v19  ;;  %v4437_v19 = vld [vmem:[%s4951_s4 + $0x758] sm:$0xff] }
 0x403   :  { %1937 = vmatpush.msrb.mxu2 %v2610_v3  ;;  %v2595_v3 = vld [vmem:[%s4951_s4 + $0x648] sm:$0xff] }
 0x404   :  { %2391 = vmatmul.msk.f32.gmra.mxu3 %vm963_vm2, %v2373_v50  ;;  %v2379_v50 = vld [vmem:[%s4952_s5 + $0x108] sm:$0xff] }
 0x405   :  { %1938 = vmatpush.msrb.mxu2 %v2609_v62  ;;  %v2594_v62 = vld [vmem:[%s4951_s4 + $0x640] sm:$0xff] }
 0x406   :  { %2415 = vmatmul.msk.f32.gmra.mxu2 %vm963_vm2, %v787_v49  ;;  %2487 = vmatmul.msk.f32.gmra.mxu0 %vm963_vm2, %v2469_v36  ;;  %v2475_v49 = vld [vmem:[%s4952_s5 + $0x168] sm:$0xff]  ;;  %v2380_v36 = vld [vmem:[%s4952_s5 + $0x110] sm:$0xff] }
 0x407   :  { %1939 = vmatpush.msrb.mxu2 %v2608_v53  ;;  %v2593_v53 = vld [vmem:[%s4951_s4 + $0x638] sm:$0xff] }
 0x409   :  { %1940 = vmatpush.msrb.mxu2 %v2607_v22  ;;  %v4482_v22 = vld [vmem:[%s4951_s4 + $0x738] sm:$0xff] }
 0x40b   :  { %1941 = vmatpush.msrb.mxu2 %v2606_v24 }
 0x40c   :  { %2392 = vmatmul.msk.f32.gmra.mxu3 %vm963_vm2, %v2374_v40  ;;  %v2476_v40 = vld [vmem:[%s4952_s5 + $0x170] sm:$0xff] }
 0x40d   :  { %1942 = vmatpush.msrb.mxu2 %v2605_v35  ;;  %v2590_v35 = vld [vmem:[%s4951_s4 + $0x620] sm:$0xff] }
 0x40e   :  { %2416 = vmatmul.msk.f32.gmra.mxu2 %vm963_vm2, %v788_v1  ;;  %2488 = vmatmul.msk.f32.gmra.mxu0 %vm963_vm2, %v2470_v44  ;;  %v2601_v1 = vld [vmem:[%s4951_s4 + $0x678] sm:$0xff]  ;;  %v2600_v44 = vld [vmem:[%s4951_s4 + $0x670] sm:$0xff] }
 0x40f   :  { %1943 = vmatpush.msrb.mxu2 %v2604_v23  ;;  %1895 = vmatpush.msra.mxu3 %v2601_v1  ;;  %v2589_v23 = vld [vmem:[%s4951_s4 + $0x618] sm:$0xff]  ;;  %v4560_v1 = vld [vmem:[%s4951_s4 + $0x700] sm:$0xff] }
 0x411   :  { %v4248_v20 = vpop.f32.mrf.mxu2  ;;  %1944 = vmatpush.msrb.mxu2 %v2603_v0  ;;  %1896 = vmatpush.msra.mxu3 %v2600_v44  ;;  %v4529_v0 = vld [vmem:[%s4951_s4 + $0x718] sm:$0xff] }
 0x413   :  { %1945 = vmatpush.msrb.mxu2 %v2602_v54 }
 0x414   :  { %2393 = vmatmul.msk.f32.gmra.mxu3 %vm963_vm2, %v2375_v17  ;;  %v2599_v17 = vld [vmem:[%s4951_s4 + $0x668] sm:$0xff] }
 0x415   :  { %1897 = vmatpush.msra.mxu3 %v2599_v17 }
 0x416   :  { %2417 = vmatmul.msk.f32.gmra.mxu2 %vm963_vm2, %v789_v12  ;;  %2489 = vmatmul.msk.f32.gmra.mxu0 %vm963_vm2, %v2471_v58  ;;  %v2381_v12 = vld [vmem:[%s4952_s5 + $0x118] sm:$0xff]  ;;  %v4411_v58 = vld [vmem:[%s4951_s4 + $0x768] sm:$0xff] }
 0x417   :  { %1967 = vmatpush.msrb.mxu0 %v4411_v58 }
 0x419   :  { %v4287_v38 = vpop.f32.mrf.mxu2  ;;  %1968 = vmatpush.msrb.mxu0 %v4424_v32 }
 0x41b   :  { %1969 = vmatpush.msrb.mxu0 %v4437_v19 }
 0x41c   :  { %2394 = vmatmul.msk.f32.gmra.mxu3 %vm963_vm2, %v2376_v46  ;;  %v2596_v46 = vld [vmem:[%s4951_s4 + $0x650] sm:$0xff] }
 0x41d   :  { %1970 = vmatpush.msrb.mxu0 %v4449_v52 }
 0x41e   :  { %2490 = vmatmul.msk.f32.gmra.mxu0 %vm963_vm2, %v2472_v27  ;;  %1665 = vmatmul.f32.vlgmr.msra.gmra.mxu2 %v3648_v21 }
 0x421   :  { %v4330_v37 = vpop.f32.mrf.mxu2 }
 0x424   :  { %2395 = vmatmul.msk.f32.gmra.mxu3 %vm963_vm2, %v2377_v34  ;;  %v4471_v34 = vld [vmem:[%s4951_s4 + $0x740] sm:$0xff] }
 0x426   :  { %2491 = vmatmul.msk.f32.gmra.mxu0 %vm963_vm2, %v2473_v59  ;;  %1668 = vmatmul.f32.gmra.mxu2 %v3673_v25 }
 0x429   :  { %v4356_v55 = vpop.f32.mrf.mxu2 }
 0x42c   :  { %2396 = vmatmul.msk.f32.gmra.mxu3 %vm963_vm2, %v2378_v61  ;;  %v4518_v61 = vld [vmem:[%s4951_s4 + $0x720] sm:$0xff] }
 0x42e   :  { %2492 = vmatmul.msk.f32.gmra.mxu0 %vm963_vm2, %v2474_v28  ;;  %1671 = vmatmul.f32.gmra.mxu2 %v3677_v26 }
 0x431   :  { %v4370_v57 = vpop.f32.mrf.mxu2 }
 0x434   :  { %2397 = vmatmul.msk.f32.gmra.mxu3 %vm963_vm2, %v2379_v50  ;;  %v2587_v50 = vld [vmem:[%s4951_s4 + $0x608] sm:$0xff] }
 0x436   :  { %2493 = vmatmul.msk.f32.gmra.mxu0 %vm963_vm2, %v2475_v49  ;;  %1674 = vmatmul.f32.gmra.mxu2 %v3687_v39 }
 0x439   :  { %v4426_v30 = vpop.f32.mrf.mxu2 }
 0x43c   :  { %2398 = vmatmul.msk.f32.gmra.mxu3 %vm963_vm2, %v2380_v36  ;;  %v2586_v36 = vld [vmem:[%s4951_s4 + $0x600] sm:$0xff] }
 0x43e   :  { %2494 = vmatmul.msk.f32.gmra.mxu0 %vm963_vm2, %v2476_v40  ;;  %1677 = vmatmul.f32.gmra.mxu2 %v3718_v42  ;;  %v2480_v40 = vld [vmem:[%s4952_s5 + $0x190] sm:$0xff] }
 0x43f   :  { %v1035_v43 = vpop.f32.mrf.mxu3 }
 0x440   :  { %v4391_v29 = vadd.f32 %v4248_v20, %v1035_v43  ;;  %v2598_v20 = vld [vmem:[%s4951_s4 + $0x660] sm:$0xff] }
 0x441   :  { %1898 = vmatpush.msra.mxu3 %v2598_v20  ;;  %v4484_v59 = vpop.f32.mrf.mxu2 }
 0x443   :  { %1899 = vmatpush.msra.mxu3 %v2597_v8 }
 0x444   :  { %2399 = vmatmul.msk.f32.gmra.mxu3 %vm963_vm2, %v2381_v12  ;;  %v2481_v12 = vld [vmem:[%s4952_s5 + $0x198] sm:$0xff] }
 0x445   :  { %1900 = vmatpush.msra.mxu3 %v2596_v46 }
 0x446   :  { %2495 = vmatmul.msk.f32.gmra.mxu0 %vm963_vm2, %v2477_v45  ;;  %1680 = vmatmul.f32.gmra.mxu2 %v3750_v41 }
 0x447   :  { %v1038_v27 = vpop.f32.mrf.mxu3  ;;  %1901 = vmatpush.msra.mxu3 %v2595_v3 }
 0x448   :  { %v4441_v9 = vadd.f32 %v4287_v38, %v1038_v27  ;;  %v4458_v38 = vld [vmem:[%s4951_s4 + $0x748] sm:$0xff] }
 0x449   :  { %1902 = vmatpush.msra.mxu3 %v2594_v62  ;;  %1971 = vmatpush.msrb.mxu0 %v4458_v38  ;;  %v4541_v49 = vpop.f32.mrf.mxu2 }
 0x44b   :  { %1903 = vmatpush.msra.mxu3 %v2593_v53  ;;  %1972 = vmatpush.msrb.mxu0 %v4471_v34 }
 0x44c   :  { %1630 = vmatmul.f32.vlgmr.msrb.gmra.mxu3 %v3739_v48 }
 0x44d   :  { %1904 = vmatpush.msra.mxu3 %v2592_v14  ;;  %1973 = vmatpush.msrb.mxu0 %v4482_v22 }
 0x44e   :  { %2496 = vmatmul.msk.f32.gmra.mxu0 %vm963_vm2, %v2478_v63  ;;  %1946 = vmatmul.f32.vlgmr.msrb.gmra.mxu2 %v3739_v48  ;;  %v2591_v48 = vld [vmem:[%s4951_s4 + $0x628] sm:$0xff] }
 0x44f   :  { %v1041_v16 = vpop.f32.mrf.mxu3  ;;  %1905 = vmatpush.msra.mxu3 %v2591_v48  ;;  %1974 = vmatpush.msrb.mxu0 %v4496_v33 }
 0x450   :  { %v4488_v24 = vadd.f32 %v4330_v37, %v1041_v16  ;;  %v4505_v37 = vld [vmem:[%s4951_s4 + $0x728] sm:$0xff] }
 0x451   :  { %1906 = vmatpush.msra.mxu3 %v2590_v35  ;;  %1975 = vmatpush.msrb.mxu0 %v4505_v37  ;;  %v1184_v17 = vpop.f32.mrf.mxu2 }
 0x453   :  { %1907 = vmatpush.msra.mxu3 %v2589_v23  ;;  %1976 = vmatpush.msrb.mxu0 %v4518_v61 }
 0x454   :  { %1633 = vmatmul.f32.gmra.mxu3 %v3771_v4 }
 0x455   :  { %1908 = vmatpush.msra.mxu3 %v2588_v15  ;;  %1977 = vmatpush.msrb.mxu0 %v4529_v0 }
 0x456   :  { %2497 = vmatmul.msk.f32.gmra.mxu0 %vm963_vm2, %v2479_v60  ;;  %1949 = vmatmul.f32.gmra.mxu2 %v3771_v4  ;;  %v4539_v4 = vld [vmem:[%s4951_s4 + $0x710] sm:$0xff] }
 0x457   :  { %v1044_v28 = vpop.f32.mrf.mxu3  ;;  %1909 = vmatpush.msra.mxu3 %v2587_v50  ;;  %1978 = vmatpush.msrb.mxu0 %v4539_v4 }
 0x458   :  { %v1170_v54 = vadd.f32 %v4356_v55, %v1044_v28  ;;  %v4550_v55 = vld [vmem:[%s4951_s4 + $0x708] sm:$0xff] }
 0x459   :  { %1910 = vmatpush.msra.mxu3 %v2586_v36  ;;  %1979 = vmatpush.msrb.mxu0 %v4550_v55  ;;  %v1187_v46 = vpop.f32.mrf.mxu2 }
 0x45b   :  { %1980 = vmatpush.msrb.mxu0 %v4560_v1 }
 0x45c   :  { %1636 = vmatmul.f32.gmra.mxu3 %v3800_v31 }
 0x45e   :  { %2498 = vmatmul.msk.f32.gmra.mxu0 %vm963_vm2, %v2480_v40  ;;  %1952 = vmatmul.f32.gmra.mxu2 %v3800_v31  ;;  %v2482_v31 = vld [vmem:[%s4952_s5 + $0x1a0] sm:$0xff] }
 0x45f   :  { %v1047_v44 = vpop.f32.mrf.mxu3 }
 0x460   :  { %v1173_v43 = vadd.f32 %v4370_v57, %v1047_v44 }
 0x464   :  { %1639 = vmatmul.f32.gmra.mxu3 %v3805_v56 }
 0x466   :  { %2499 = vmatmul.msk.f32.gmra.mxu0 %vm963_vm2, %v2481_v12  ;;  %1955 = vmatmul.f32.gmra.mxu2 %v3805_v56 }
 0x467   :  { %v1050_v20 = vpop.f32.mrf.mxu3 }
 0x468   :  { %v1176_v45 = vadd.f32 %v4426_v30, %v1050_v20  ;;  %v2483_v30 = vld [vmem:[%s4952_s5 + $0x1a8] sm:$0xff] }
 0x46b   :  { %v1458_v8 = vpop.f32.mrf.mxu0 }
 0x46c   :  { %v4577_v57 = vadd.f32 %v1458_v8, %v4391_v29  ;;  %1642 = vmatmul.f32.gmra.mxu3 %v3810_v6  ;;  %v1190_v29 = vpop.f32.mrf.mxu2 }
 0x46e   :  { %2500 = vmatmul.msk.f32.gmra.mxu0 %vm963_vm2, %v2482_v31  ;;  %1958 = vmatmul.f32.gmra.mxu2 %v3810_v6 }
 0x46f   :  { %v1053_v27 = vpop.f32.mrf.mxu3 }
 0x473   :  { %v1461_v56 = vpop.f32.mrf.mxu0 }
 0x474   :  { %v4586_v3 = vadd.f32 %v1461_v56, %v4441_v9  ;;  %1645 = vmatmul.f32.gmra.mxu3 %v3839_v51  ;;  %v1193_v14 = vpop.f32.mrf.mxu2 }
 0x476   :  { %2501 = vmatmul.msk.f32.gmra.mxu0 %vm963_vm2, %v2483_v30  ;;  %1961 = vmatmul.f32.gmra.mxu2 %v3839_v51 }
 0x477   :  { %v1056_v62 = vpop.f32.mrf.mxu3 }
 0x47b   :  { %v1464_v63 = vpop.f32.mrf.mxu0 }
 0x47c   :  { %v4592_v6 = vadd.f32 %v1464_v63, %v4488_v24  ;;  %1911 = vmatmul.f32.vlgmr.msra.gmra.mxu3 %v3420_v7  ;;  %v1196_v48 = vpop.f32.mrf.mxu2 }
 0x47e   :  { %1981 = vmatmul.f32.vlgmr.msrb.gmra.mxu0 %v3648_v21 }
 0x47f   :  { %v1059_v53 = vpop.f32.mrf.mxu3 }
 0x480   :  { %v1185_v40 = vadd.f32 %v1184_v17, %v1059_v53  ;;  %v1596_v17 = vpop.f32.mrf.mxu1 }
 0x483   :  { %v1467_v9 = vpop.f32.mrf.mxu0 }
 0x484   :  { %v4596_v16 = vadd.f32 %v1467_v9, %v1170_v54  ;;  %1914 = vmatmul.f32.gmra.mxu3 %v3424_v11  ;;  %v1199_v23 = vpop.f32.mrf.mxu2  ;;  %v1182_v54 = vadd.f32 %v4541_v49, %v1056_v62 }
 0x486   :  { %1984 = vmatmul.f32.gmra.mxu0 %v3673_v25  ;;  %v1179_v25 = vadd.f32 %v4484_v59, %v1053_v27 }
 0x487   :  { %v1062_v51 = vpop.f32.mrf.mxu3 }
 0x488   :  { %v1188_v12 = vadd.f32 %v1187_v46, %v1062_v51 }
 0x48b   :  { %v1470_v35 = vpop.f32.mrf.mxu0 }
 0x48c   :  { %v4600_v60 = vadd.f32 %v1470_v35, %v1173_v43  ;;  %1917 = vmatmul.f32.gmra.mxu3 %v3428_v13  ;;  %v1202_v13 = vpop.f32.mrf.mxu2  ;;  %v1599_v35 = vpop.f32.mrf.mxu1 }
 0x48e   :  { %1987 = vmatmul.f32.gmra.mxu0 %v3677_v26 }
 0x48f   :  { %v1065_v7 = vpop.f32.mrf.mxu3 }
 0x490   :  { %v1191_v8 = vadd.f32 %v1190_v29, %v1065_v7 }
 0x493   :  { %v1473_v21 = vpop.f32.mrf.mxu0 }
 0x494   :  { %v4604_v24 = vadd.f32 %v1473_v21, %v1176_v45  ;;  %1920 = vmatmul.f32.gmra.mxu3 %v3435_v18 }
 0x496   :  { %1990 = vmatmul.f32.gmra.mxu0 %v3687_v39  ;;  %v1205_v39 = vpop.f32.mrf.mxu2 }
 0x497   :  { %v1068_v11 = vpop.f32.mrf.mxu3 }
 0x49b   :  { %v1476_v15 = vpop.f32.mrf.mxu0 }
 0x49c   :  { %v4609_v28 = vadd.f32 %v1476_v15, %v1179_v25  ;;  %1923 = vmatmul.f32.gmra.mxu3 %v3443_v10 }
 0x49e   :  { %1993 = vmatmul.f32.gmra.mxu0 %v3718_v42  ;;  %v1208_v10 = vpop.f32.mrf.mxu2 }
 0x49f   :  { %v1071_v26 = vpop.f32.mrf.mxu3 }
 0x4a0   :  { %v1197_v9 = vadd.f32 %v1196_v48, %v1071_v26 }
 0x4a3   :  { %v1479_v50 = vpop.f32.mrf.mxu0 }
 0x4a4   :  { %v4614_v36 = vadd.f32 %v1479_v50, %v1182_v54  ;;  %1926 = vmatmul.f32.gmra.mxu3 %v3455_v2  ;;  %v1194_v2 = vadd.f32 %v1193_v14, %v1068_v11  ;;  %v1602_v50 = vpop.f32.mrf.mxu1 }
 0x4a6   :  { %v1211_v27 = vpop.f32.mrf.mxu2 }
 0x4a7   :  { %v1074_v18 = vpop.f32.mrf.mxu3 }
 0x4a8   :  { %v1200_v29 = vadd.f32 %v1199_v23, %v1074_v18 }
 0x4ab   :  { %v1482_v59 = vpop.f32.mrf.mxu0 }
 0x4ac   :  { %v4617_v44 = vadd.f32 %v1482_v59, %v1185_v40  ;;  %v1605_v48 = vpop.f32.mrf.mxu1 }
 0x4ae   :  { %v1666_v63 = vpop.f32.mrf.mxu2 }
 0x4af   :  { %v1077_v43 = vpop.f32.mrf.mxu3 }
 0x4b0   :  { %v1203_v14 = vadd.f32 %v1202_v13, %v1077_v43 }
 0x4b3   :  { %v1485_v20 = vpop.f32.mrf.mxu0 }
 0x4b4   :  { %v4619_v42 = vadd.f32 %v1485_v20, %v1188_v12 }
 0x4b6   :  { %v1669_v25 = vpop.f32.mrf.mxu2 }
 0x4b7   :  { %v1080_v45 = vpop.f32.mrf.mxu3 }
 0x4b8   :  { %v1206_v20 = vadd.f32 %v1205_v39, %v1080_v45 }
 0x4bb   :  { %v1488_v49 = vpop.f32.mrf.mxu0 }
 0x4bc   :  { %v4621_v31 = vadd.f32 %v1488_v49, %v1191_v8 }
 0x4be   :  { %v1672_v11 = vpop.f32.mrf.mxu2 }
 0x4bf   :  { %v1083_v56 = vpop.f32.mrf.mxu3 }
 0x4c3   :  { %v1491_v30 = vpop.f32.mrf.mxu0 }
 0x4c4   :  { %v4623_v62 = vadd.f32 %v1491_v30, %v1194_v2  ;;  %v1209_v30 = vadd.f32 %v1208_v10, %v1083_v56 }
 0x4c6   :  { %v1675_v49 = vpop.f32.mrf.mxu2 }
 0x4c7   :  { %v1086_v53 = vpop.f32.mrf.mxu3 }
 0x4c8   :  { %v1212_v13 = vadd.f32 %v1211_v27, %v1086_v53 }
 0x4cb   :  { %v1494_v46 = vpop.f32.mrf.mxu0 }
 0x4cc   :  { %v4625_v51 = vadd.f32 %v1494_v46, %v1197_v9  ;;  %v1608_v9 = vpop.f32.mrf.mxu1 }
 0x4ce   :  { %v1678_v46 = vpop.f32.mrf.mxu2 }
 0x4cf   :  { %v1631_v21 = vpop.f32.mrf.mxu3 }
 0x4d3   :  { %v1497_v7 = vpop.f32.mrf.mxu0 }
 0x4d4   :  { %v4627_v15 = vadd.f32 %v1497_v7, %v1200_v29 }
 0x4d6   :  { %4955 = vst [vmem:[#allocation6_spill] sm:$0xff] %v4627_v15 }
 0x4d7   :  { %v1634_v54 = vpop.f32.mrf.mxu3 }
 0x4d8   :  { %v1635_v10 = vadd.f32 %v1634_v54, %v1599_v35 }
 0x4da   :  { %v1670_v27 = vadd.f32 %v1669_v25, %v1635_v10 }
 0x4db   :  { %v1500_v40 = vpop.f32.mrf.mxu0 }
 0x4dc   :  { %v4629_v59 = vadd.f32 %v1500_v40, %v1203_v14  ;;  %v1611_v14 = vpop.f32.mrf.mxu1 }
 0x4de   :  { %4956 = vst [vmem:[#allocation7_spill] sm:$0xff] %v4629_v59  ;;  %v1681_v59 = vpop.f32.mrf.mxu2 }
 0x4df   :  { %v1637_v12 = vpop.f32.mrf.mxu3 }
 0x4e3   :  { %v1503_v26 = vpop.f32.mrf.mxu0 }
 0x4e4   :  { %v4631_v8 = vadd.f32 %v1503_v26, %v1206_v20 }
 0x4e6   :  { %4957 = vst [vmem:[#allocation8_spill] sm:$0xff] %v4631_v8  ;;  %v1638_v8 = vadd.f32 %v1637_v12, %v1602_v50 }
 0x4e7   :  { %v1640_v2 = vpop.f32.mrf.mxu3 }
 0x4e8   :  { %v1641_v20 = vadd.f32 %v1640_v2, %v1605_v48 }
 0x4ea   :  { %v1676_v56 = vadd.f32 %v1675_v49, %v1641_v20 }
 0x4eb   :  { %v1506_v23 = vpop.f32.mrf.mxu0 }
 0x4ec   :  { %v4633_v18 = vadd.f32 %v1506_v23, %v1209_v30  ;;  %v1632_v30 = vadd.f32 %v1631_v21, %v1596_v17  ;;  %v1673_v23 = vadd.f32 %v1672_v11, %v1638_v8  ;;  %v2551_v17 = vld [vmem:[%s4952_s5 + $0x1b8] sm:$0xff] }
 0x4ed   :  { %v2567_v21 = vld [vmem:[%s4952_s5 + $0x238] sm:$0xff] }
 0x4ee   :  { %v1667_v53 = vadd.f32 %v1666_v63, %v1632_v30 }
 0x4ef   :  { %v1643_v29 = vpop.f32.mrf.mxu3 }
 0x4f0   :  { %v1644_v39 = vadd.f32 %v1643_v29, %v1608_v9  ;;  %v2550_v9 = vld [vmem:[%s4952_s5 + $0x1b0] sm:$0xff] }
 0x4f2   :  { %v1679_v15 = vadd.f32 %v1678_v46, %v1644_v39 }
 0x4f3   :  { %v1509_v43 = vpop.f32.mrf.mxu0 }
 0x4f4   :  { %v4635_v7 = vadd.f32 %v1509_v43, %v1212_v13  ;;  %v1947_v43 = vpop.f32.mrf.mxu2 }
 0x4f7   :  { %v1646_v40 = vpop.f32.mrf.mxu3 }
 0x4f8   :  { %v1647_v45 = vadd.f32 %v1646_v40, %v1611_v14 }
 0x4fa   :  { %v1682_v26 = vadd.f32 %v1681_v59, %v1647_v45  ;;  %v4958_v45 = vld [vmem:[#allocation6_spill] sm:$0xff] }
 0x4fb   :  { %v1982_v20 = vpop.f32.mrf.mxu0 }
 0x4fc   :  { %1767 = vmatpush.msrb.mxu1 %v1682_v26  ;;  %v1950_v40 = vpop.f32.mrf.mxu2 }
 0x4fe   :  { %1768 = vmatpush.msrb.mxu1 %v1679_v15 }
 0x4ff   :  { %v1912_v13 = vpop.f32.mrf.mxu3 }
 0x500   :  { %1769 = vmatpush.msrb.mxu1 %v1676_v56  ;;  %v4959_v56 = vld [vmem:[#allocation7_spill] sm:$0xff] }
 0x502   :  { %1770 = vmatpush.msrb.mxu1 %v1673_v23 }
 0x504   :  { %1771 = vmatpush.msrb.mxu1 %v1670_v27 }
 0x506   :  { %1772 = vmatpush.msrb.mxu1 %v1667_v53  ;;  %v4960_v53 = vld [vmem:[#allocation8_spill] sm:$0xff] }
 0x507   :  { %2568 = vmatmul.msk.f32.vlgmr.msrb.gmra.mxu1 %vm963_vm2, %v2550_v9 }
 0x508   :  { %2689 = vmatpush.msra.mxu1 %v4387_v5  ;;  %v2552_v5 = vld [vmem:[%s4952_s5 + $0x1c0] sm:$0xff] }
 0x50a   :  { %2690 = vmatpush.msra.mxu1 %v4399_v47  ;;  %v2553_v47 = vld [vmem:[%s4952_s5 + $0x1c8] sm:$0xff] }
 0x50c   :  { %2691 = vmatpush.msra.mxu1 %v4411_v58  ;;  %v2554_v58 = vld [vmem:[%s4952_s5 + $0x1d0] sm:$0xff] }
 0x50e   :  { %2692 = vmatpush.msra.mxu1 %v4424_v32  ;;  %v2555_v32 = vld [vmem:[%s4952_s5 + $0x1d8] sm:$0xff] }
 0x50f   :  { %2569 = vmatmul.msk.f32.gmra.mxu1 %vm963_vm2, %v2551_v17 }
 0x510   :  { %2693 = vmatpush.msra.mxu1 %v4437_v19  ;;  %v2556_v19 = vld [vmem:[%s4952_s5 + $0x1e0] sm:$0xff] }
 0x512   :  { %2694 = vmatpush.msra.mxu1 %v4449_v52  ;;  %v2557_v52 = vld [vmem:[%s4952_s5 + $0x1e8] sm:$0xff] }
 0x514   :  { %2695 = vmatpush.msra.mxu1 %v4458_v38  ;;  %v2558_v38 = vld [vmem:[%s4952_s5 + $0x1f0] sm:$0xff] }
 0x516   :  { %2696 = vmatpush.msra.mxu1 %v4471_v34  ;;  %v2559_v34 = vld [vmem:[%s4952_s5 + $0x1f8] sm:$0xff] }
 0x517   :  { %2570 = vmatmul.msk.f32.gmra.mxu1 %vm963_vm2, %v2552_v5 }
 0x518   :  { %2697 = vmatpush.msra.mxu1 %v4482_v22  ;;  %v2560_v22 = vld [vmem:[%s4952_s5 + $0x200] sm:$0xff] }
 0x51a   :  { %2698 = vmatpush.msra.mxu1 %v4496_v33  ;;  %v2561_v33 = vld [vmem:[%s4952_s5 + $0x208] sm:$0xff] }
 0x51c   :  { %2699 = vmatpush.msra.mxu1 %v4505_v37  ;;  %v2562_v37 = vld [vmem:[%s4952_s5 + $0x210] sm:$0xff] }
 0x51e   :  { %2700 = vmatpush.msra.mxu1 %v4518_v61  ;;  %v2563_v61 = vld [vmem:[%s4952_s5 + $0x218] sm:$0xff] }
 0x51f   :  { %2571 = vmatmul.msk.f32.gmra.mxu1 %vm963_vm2, %v2553_v47 }
 0x520   :  { %2701 = vmatpush.msra.mxu1 %v4529_v0  ;;  %v2564_v0 = vld [vmem:[%s4952_s5 + $0x220] sm:$0xff] }
 0x522   :  { %2702 = vmatpush.msra.mxu1 %v4539_v4  ;;  %v2565_v4 = vld [vmem:[%s4952_s5 + $0x228] sm:$0xff] }
 0x524   :  { %2703 = vmatpush.msra.mxu1 %v4550_v55 }
 0x526   :  { %2704 = vmatpush.msra.mxu1 %v4560_v1  ;;  %v2566_v1 = vld [vmem:[%s4952_s5 + $0x230] sm:$0xff] }
 0x527   :  { %2572 = vmatmul.msk.f32.gmra.mxu1 %vm963_vm2, %v2554_v58 }
 0x52f   :  { %2573 = vmatmul.msk.f32.gmra.mxu1 %vm963_vm2, %v2555_v32 }
 0x537   :  { %2574 = vmatmul.msk.f32.gmra.mxu1 %vm963_vm2, %v2556_v19 }
 0x53f   :  { %2575 = vmatmul.msk.f32.gmra.mxu1 %vm963_vm2, %v2557_v52 }
 0x547   :  { %2576 = vmatmul.msk.f32.gmra.mxu1 %vm963_vm2, %v2558_v38 }
 0x54f   :  { %2577 = vmatmul.msk.f32.gmra.mxu1 %vm963_vm2, %v2559_v34 }
 0x557   :  { %2578 = vmatmul.msk.f32.gmra.mxu1 %vm963_vm2, %v2560_v22 }
 0x55f   :  { %2579 = vmatmul.msk.f32.gmra.mxu1 %vm963_vm2, %v2561_v33 }
 0x567   :  { %2580 = vmatmul.msk.f32.gmra.mxu1 %vm963_vm2, %v2562_v37 }
 0x56f   :  { %2581 = vmatmul.msk.f32.gmra.mxu1 %vm963_vm2, %v2563_v61 }
 0x577   :  { %2582 = vmatmul.msk.f32.gmra.mxu1 %vm963_vm2, %v2564_v0 }
 0x57f   :  { %2583 = vmatmul.msk.f32.gmra.mxu1 %vm963_vm2, %v2565_v4 }
 0x584   :  { %v1774_v55 = vpop.f32.mrf.mxu1 }
 0x585   :  { %v4721_v63 = vadd.f32 %v1774_v55, %v4577_v57 }
 0x587   :  { %2584 = vmatmul.msk.f32.gmra.mxu1 %vm963_vm2, %v2566_v1 }
 0x58c   :  { %v1777_v35 = vpop.f32.mrf.mxu1 }
 0x58d   :  { %v4728_v25 = vadd.f32 %v1777_v35, %v4586_v3 }
 0x58f   :  { %2585 = vmatmul.msk.f32.gmra.mxu1 %vm963_vm2, %v2567_v21 }
 0x594   :  { %v1780_v15 = vpop.f32.mrf.mxu1 }
 0x595   :  { %v4732_v54 = vadd.f32 %v1780_v15, %v4592_v6  ;;  %v1948_v15 = vadd.f32 %v1947_v43, %v1912_v13  ;;  %v2641_v13 = vld [vmem:[%s4952_s5 + $0x278] sm:$0xff]  ;;  %v2642_v43 = vld [vmem:[%s4952_s5 + $0x280] sm:$0xff] }
 0x597   :  { %1996 = vmatmul.f32.vlgmr.msra.gmra.mxu1 %v3750_v41 }
 0x59c   :  { %v1783_v57 = vpop.f32.mrf.mxu1 }
 0x59d   :  { %v4736_v50 = vadd.f32 %v1783_v57, %v4596_v16 }
 0x5a4   :  { %v1786_v11 = vpop.f32.mrf.mxu1 }
 0x5a5   :  { %v4739_v59 = vadd.f32 %v1786_v11, %v4600_v60 }
 0x5ac   :  { %v1789_v12 = vpop.f32.mrf.mxu1 }
 0x5ad   :  { %v4742_v3 = vadd.f32 %v1789_v12, %v4604_v24  ;;  %v2634_v12 = vld [vmem:[%s4952_s5 + $0x240] sm:$0xff] }
 0x5b4   :  { %v1792_v48 = vpop.f32.mrf.mxu1 }
 0x5b5   :  { %v4745_v8 = vadd.f32 %v1792_v48, %v4609_v28  ;;  %v2635_v48 = vld [vmem:[%s4952_s5 + $0x248] sm:$0xff] }
 0x5bc   :  { %v1795_v6 = vpop.f32.mrf.mxu1 }
 0x5bd   :  { %v4748_v49 = vadd.f32 %v1795_v6, %v4614_v36  ;;  %v2636_v6 = vld [vmem:[%s4952_s5 + $0x250] sm:$0xff] }
 0x5c4   :  { %v1798_v41 = vpop.f32.mrf.mxu1 }
 0x5c5   :  { %v4751_v16 = vadd.f32 %v1798_v41, %v4617_v44  ;;  %v1915_v44 = vpop.f32.mrf.mxu3  ;;  %v2637_v41 = vld [vmem:[%s4952_s5 + $0x258] sm:$0xff] }
 0x5cc   :  { %v1801_v2 = vpop.f32.mrf.mxu1 }
 0x5cd   :  { %v4754_v60 = vadd.f32 %v1801_v2, %v4619_v42  ;;  %v1918_v26 = vpop.f32.mrf.mxu3  ;;  %v2638_v2 = vld [vmem:[%s4952_s5 + $0x260] sm:$0xff] }
 0x5d4   :  { %v1804_v46 = vpop.f32.mrf.mxu1 }
 0x5d5   :  { %v4757_v24 = vadd.f32 %v1804_v46, %v4621_v31  ;;  %v1953_v31 = vpop.f32.mrf.mxu2  ;;  %v1921_v23 = vpop.f32.mrf.mxu3  ;;  %v2639_v46 = vld [vmem:[%s4952_s5 + $0x268] sm:$0xff] }
 0x5d6   :  { %v1954_v1 = vadd.f32 %v1953_v31, %v1918_v26  ;;  %v2649_v26 = vld [vmem:[%s4952_s5 + $0x2b8] sm:$0xff]  ;;  %v2650_v31 = vld [vmem:[%s4952_s5 + $0x2c0] sm:$0xff] }
 0x5dc   :  { %v1807_v29 = vpop.f32.mrf.mxu1 }
 0x5dd   :  { %v4760_v28 = vadd.f32 %v1807_v29, %v4623_v62  ;;  %v1985_v62 = vpop.f32.mrf.mxu0  ;;  %v1924_v58 = vpop.f32.mrf.mxu3  ;;  %v2640_v29 = vld [vmem:[%s4952_s5 + $0x270] sm:$0xff] }
 0x5e4   :  { %v1810_v36 = vpop.f32.mrf.mxu1 }
 0x5e5   :  { %v4763_v14 = vadd.f32 %v1810_v36, %v4625_v51  ;;  %v1956_v51 = vpop.f32.mrf.mxu2  ;;  %v1988_v17 = vpop.f32.mrf.mxu0  ;;  %v2643_v36 = vld [vmem:[%s4952_s5 + $0x288] sm:$0xff] }
 0x5e6   :  { %v1927_v34 = vpop.f32.mrf.mxu3  ;;  %v1957_v0 = vadd.f32 %v1956_v51, %v1921_v23  ;;  %v1989_v57 = vadd.f32 %v1988_v17, %v1954_v1  ;;  %v2651_v23 = vld [vmem:[%s4952_s5 + $0x2c8] sm:$0xff] }
 0x5ec   :  { %v1813_v39 = vpop.f32.mrf.mxu1 }
 0x5ed   :  { %v4766_v42 = vadd.f32 %v1813_v39, %v4958_v45  ;;  %v1959_v32 = vpop.f32.mrf.mxu2  ;;  %v1991_v19 = vpop.f32.mrf.mxu0  ;;  %v2646_v39 = vld [vmem:[%s4952_s5 + $0x2a0] sm:$0xff]  ;;  %v2647_v45 = vld [vmem:[%s4952_s5 + $0x2a8] sm:$0xff] }
 0x5ee   :  { %v1960_v33 = vadd.f32 %v1959_v32, %v1924_v58  ;;  %v1992_v21 = vadd.f32 %v1991_v19, %v1957_v0 }
 0x5f4   :  { %v1816_v10 = vpop.f32.mrf.mxu1 }
 0x5f5   :  { %v4769_v30 = vadd.f32 %v1816_v10, %v4959_v56  ;;  %v1962_v22 = vpop.f32.mrf.mxu2  ;;  %v1994_v55 = vpop.f32.mrf.mxu0  ;;  %v4851_v56 = vstv %s4948_s1 }
 0x5f6   :  { %v1963_v37 = vadd.f32 %v1962_v22, %v1927_v34  ;;  %v1995_v35 = vadd.f32 %v1994_v55, %v1960_v33 }
 0x5fc   :  { %v1819_v27 = vpop.f32.mrf.mxu1 }
 0x5fd   :  { %v4772_v9 = vadd.f32 %v1819_v27, %v4960_v53 }
 0x604   :  { %v1822_v5 = vpop.f32.mrf.mxu1 }
 0x605   :  { %v4775_v47 = vadd.f32 %v1822_v5, %v4633_v18  ;;  %v1951_v18 = vadd.f32 %v1950_v40, %v1915_v44  ;;  %v2644_v44 = vld [vmem:[%s4952_s5 + $0x290] sm:$0xff]  ;;  %v2645_v40 = vld [vmem:[%s4952_s5 + $0x298] sm:$0xff] }
 0x607   :  { %v1986_v11 = vadd.f32 %v1985_v62, %v1951_v18 }
 0x60c   :  { %v1825_v52 = vpop.f32.mrf.mxu1 }
 0x60d   :  { %v4778_v38 = vadd.f32 %v1825_v52, %v4635_v7  ;;  %v1983_v7 = vadd.f32 %v1982_v20, %v1948_v15  ;;  %v2648_v20 = vld [vmem:[%s4952_s5 + $0x2b0] sm:$0xff] }
 0x614   :  { %v1997_v61 = vpop.f32.mrf.mxu1 }
 0x615   :  { %v1998_v4 = vadd.f32 %v1997_v61, %v1963_v37 }
 0x617   :  { %2083 = vmatpush.msrb.mxu3 %v1998_v4 }
 0x619   :  { %2084 = vmatpush.msrb.mxu3 %v1995_v35 }
 0x61b   :  { %2085 = vmatpush.msrb.mxu3 %v1992_v21 }
 0x61d   :  { %2086 = vmatpush.msrb.mxu3 %v1989_v57 }
 0x61f   :  { %2087 = vmatpush.msrb.mxu3 %v1986_v11 }
 0x621   :  { %2088 = vmatpush.msrb.mxu3 %v1983_v7 }
 0x622   :  { %2652 = vmatmul.msk.f32.vlgmr.msrb.gmra.mxu3 %vm963_vm2, %v2634_v12 }
 0x62a   :  { %2653 = vmatmul.msk.f32.gmra.mxu3 %vm963_vm2, %v2635_v48 }
 0x632   :  { %2654 = vmatmul.msk.f32.gmra.mxu3 %vm963_vm2, %v2636_v6 }
 0x63a   :  { %2655 = vmatmul.msk.f32.gmra.mxu3 %vm963_vm2, %v2637_v41 }
 0x642   :  { %2656 = vmatmul.msk.f32.gmra.mxu3 %vm963_vm2, %v2638_v2 }
 0x64a   :  { %2657 = vmatmul.msk.f32.gmra.mxu3 %vm963_vm2, %v2639_v46 }
 0x652   :  { %2658 = vmatmul.msk.f32.gmra.mxu3 %vm963_vm2, %v2640_v29 }
 0x65a   :  { %2659 = vmatmul.msk.f32.gmra.mxu3 %vm963_vm2, %v2641_v13 }
 0x662   :  { %2660 = vmatmul.msk.f32.gmra.mxu3 %vm963_vm2, %v2642_v43 }
 0x66a   :  { %2661 = vmatmul.msk.f32.gmra.mxu3 %vm963_vm2, %v2643_v36 }
 0x672   :  { %2662 = vmatmul.msk.f32.gmra.mxu3 %vm963_vm2, %v2644_v44 }
 0x67a   :  { %2663 = vmatmul.msk.f32.gmra.mxu3 %vm963_vm2, %v2645_v40 }
 0x682   :  { %2664 = vmatmul.msk.f32.gmra.mxu3 %vm963_vm2, %v2646_v39 }
 0x68a   :  { %2665 = vmatmul.msk.f32.gmra.mxu3 %vm963_vm2, %v2647_v45 }
 0x692   :  { %2666 = vmatmul.msk.f32.gmra.mxu3 %vm963_vm2, %v2648_v20 }
 0x69a   :  { %2667 = vmatmul.msk.f32.gmra.mxu3 %vm963_vm2, %v2649_v26 }
 0x6a2   :  { %2668 = vmatmul.msk.f32.gmra.mxu3 %vm963_vm2, %v2650_v31 }
 0x6a5   :  { %v2090_v10 = vpop.f32.mrf.mxu3 }
 0x6a6   :  { %v2144_v62 = vadd.f32 %v2090_v10, %v4721_v63 }
 0x6a8   :  { %v2164_v27 = vadd.f32 %v4851_v56, %v2144_v62 }
 0x6aa   :  { %2182 = vst [vmem:[%s4954_s7] sm:$0xff] %v2164_v27  ;;  %2669 = vmatmul.msk.f32.gmra.mxu3 %vm963_vm2, %v2651_v23 }
 0x6ad   :  { %v2093_v53 = vpop.f32.mrf.mxu3 }
 0x6ae   :  { %v2145_v51 = vadd.f32 %v2093_v53, %v4728_v25 }
 0x6b0   :  { %v2165_v17 = vadd.f32 %v4851_v56, %v2145_v51 }
 0x6b2   :  { %2183 = vst [vmem:[%s4954_s7 + $0x8] sm:$0xff] %v2165_v17 }
 0x6b5   :  { %v2096_v63 = vpop.f32.mrf.mxu3 }
 0x6b6   :  { %v2146_v5 = vadd.f32 %v2096_v63, %v4732_v54 }
 0x6b8   :  { %v2166_v58 = vadd.f32 %v4851_v56, %v2146_v5 }
 0x6ba   :  { %2184 = vst [vmem:[%s4954_s7 + $0x10] sm:$0xff] %v2166_v58 }
 0x6bd   :  { %v2099_v32 = vpop.f32.mrf.mxu3 }
 0x6be   :  { %v2147_v19 = vadd.f32 %v2099_v32, %v4736_v50 }
 0x6c0   :  { %v2167_v25 = vadd.f32 %v4851_v56, %v2147_v19 }
 0x6c2   :  { %2185 = vst [vmem:[%s4954_s7 + $0x18] sm:$0xff] %v2167_v25 }
 0x6c5   :  { %v2102_v52 = vpop.f32.mrf.mxu3 }
 0x6c6   :  { %v2148_v34 = vadd.f32 %v2102_v52, %v4739_v59 }
 0x6c8   :  { %v2168_v54 = vadd.f32 %v4851_v56, %v2148_v34 }
 0x6ca   :  { %2186 = vst [vmem:[%s4954_s7 + $0x20] sm:$0xff] %v2168_v54 }
 0x6cd   :  { %v2105_v22 = vpop.f32.mrf.mxu3 }
 0x6ce   :  { %v2149_v33 = vadd.f32 %v2105_v22, %v4742_v3 }
 0x6d0   :  { %v2169_v50 = vadd.f32 %v4851_v56, %v2149_v33 }
 0x6d2   :  { %2187 = vst [vmem:[%s4954_s7 + $0x28] sm:$0xff] %v2169_v50 }
 0x6d5   :  { %v2108_v37 = vpop.f32.mrf.mxu3 }
 0x6d6   :  { %v2150_v61 = vadd.f32 %v2108_v37, %v4745_v8 }
 0x6d8   :  { %v2170_v59 = vadd.f32 %v4851_v56, %v2150_v61 }
 0x6da   :  { %2188 = vst [vmem:[%s4954_s7 + $0x30] sm:$0xff] %v2170_v59 }
 0x6dd   :  { %v2111_v0 = vpop.f32.mrf.mxu3 }
 0x6de   :  { %v2151_v4 = vadd.f32 %v2111_v0, %v4748_v49 }
 0x6e0   :  { %v2171_v3 = vadd.f32 %v4851_v56, %v2151_v4 }
 0x6e2   :  { %2189 = vst [vmem:[%s4954_s7 + $0x38] sm:$0xff] %v2171_v3 }
 0x6e5   :  { %v2114_v55 = vpop.f32.mrf.mxu3 }
 0x6e6   :  { %v2152_v1 = vadd.f32 %v2114_v55, %v4751_v16 }
 0x6e8   :  { %v2172_v8 = vadd.f32 %v4851_v56, %v2152_v1 }
 0x6ea   :  { %2190 = vst [vmem:[%s4954_s7 + $0x40] sm:$0xff] %v2172_v8 }
 0x6ed   :  { %v2117_v35 = vpop.f32.mrf.mxu3 }
 0x6ee   :  { %v2153_v18 = vadd.f32 %v2117_v35, %v4754_v60 }
 0x6f0   :  { %v2173_v49 = vadd.f32 %v4851_v56, %v2153_v18 }
 0x6f2   :  { %2670 = vst [vmem:[%s4954_s7 + $0x48] sm:$0xff] %v2173_v49 }
 0x6f5   :  { %v2120_v21 = vpop.f32.mrf.mxu3 }
 0x6f6   :  { %v2154_v15 = vadd.f32 %v2120_v21, %v4757_v24 }
 0x6f8   :  { %v2174_v16 = vadd.f32 %v4851_v56, %v2154_v15 }
 0x6fa   :  { %2671 = vst [vmem:[%s4954_s7 + $0x50] sm:$0xff] %v2174_v16 }
 0x6fd   :  { %v2123_v57 = vpop.f32.mrf.mxu3 }
 0x6fe   :  { %v2155_v11 = vadd.f32 %v2123_v57, %v4760_v28 }
 0x700   :  { %v2175_v60 = vadd.f32 %v4851_v56, %v2155_v11 }
 0x702   :  { %2672 = vst [vmem:[%s4954_s7 + $0x58] sm:$0xff] %v2175_v60 }
 0x705   :  { %v2126_v7 = vpop.f32.mrf.mxu3 }
 0x706   :  { %v2156_v12 = vadd.f32 %v2126_v7, %v4763_v14 }
 0x708   :  { %v2176_v24 = vadd.f32 %v4851_v56, %v2156_v12 }
 0x70a   :  { %2673 = vst [vmem:[%s4954_s7 + $0x60] sm:$0xff] %v2176_v24 }
 0x70d   :  { %v2129_v48 = vpop.f32.mrf.mxu3 }
 0x70e   :  { %v2157_v6 = vadd.f32 %v2129_v48, %v4766_v42 }
 0x710   :  { %v2177_v28 = vadd.f32 %v4851_v56, %v2157_v6 }
 0x712   :  { %2674 = vst [vmem:[%s4954_s7 + $0x68] sm:$0xff] %v2177_v28 }
 0x715   :  { %v2132_v41 = vpop.f32.mrf.mxu3 }
 0x716   :  { %v2158_v2 = vadd.f32 %v2132_v41, %v4769_v30 }
 0x718   :  { %v2178_v14 = vadd.f32 %v4851_v56, %v2158_v2 }
 0x71a   :  { %2675 = vst [vmem:[%s4954_s7 + $0x70] sm:$0xff] %v2178_v14 }
 0x71d   :  { %v2135_v46 = vpop.f32.mrf.mxu3 }
 0x71e   :  { %v2159_v29 = vadd.f32 %v2135_v46, %v4772_v9 }
 0x720   :  { %v2179_v42 = vadd.f32 %v4851_v56, %v2159_v29 }
 0x722   :  { %2676 = vst [vmem:[%s4954_s7 + $0x78] sm:$0xff] %v2179_v42 }
 0x725   :  { %v2138_v13 = vpop.f32.mrf.mxu3 }
 0x726   :  { %v2160_v43 = vadd.f32 %v2138_v13, %v4775_v47 }
 0x728   :  { %v2180_v30 = vadd.f32 %v4851_v56, %v2160_v43 }
 0x72a   :  { %2677 = vst [vmem:[%s4954_s7 + $0x80] sm:$0xff] %v2180_v30 }
 0x72d   :  { %v2141_v36 = vpop.f32.mrf.mxu3 }
 0x72e   :  { %v2161_v44 = vadd.f32 %v2141_v36, %v4778_v38 }
 0x730   :  { %v2181_v9 = vadd.f32 %v4851_v56, %v2161_v44 }
 0x732   :  { %2678 = vst [vmem:[%s4954_s7 + $0x88] sm:$0xff] %v2181_v9 }
 0x733   :  { %2205 = vsyncpa [#allocation4], 1 }

</bundles_post_ra>
